<compile_context>
chip_gen: v7x
topology: tpu7x:2x2x1
jax: 0.10.0
libtpu: 0.0.40
codegen_flags: <defaults>
</compile_context>

<pallas_src>
import functools

import jax
import jax.numpy as jnp
from jax.experimental import pallas as pl
from jax.experimental.pallas import tpu as pltpu


# ----------------------------- Pallas kernel ------------------------------ #

def _mcsl_group_kernel(x_ref, w0_ref, b0_ref, whc_ref, bh_ref, wo_ref, bo_ref,
                       sel_ref, o_ref, whb_ref, *, num_hidden_layers, slope):
    """Grid = (groups, row tiles); one step = one (group, row-tile) pair.

    x_ref   : (TN, d)                    f32  input rows for this tile
    w0_ref  : (1, d, ghid)               bf16 mask-folded first-layer weights
    b0_ref  : (1, 1, ghid)               f32
    whc_ref : (1, L, G, hidden, hidden)  bf16 compact hidden-layer weights
    bh_ref  : (1, L, 1, ghid)            f32
    wo_ref  : (1, G, ghid)               bf16 stacked output weights (transposed)
    bo_ref  : (1, G, 1)                  f32
    sel_ref : (G, hidden, ghid)          bf16 0/1 selection: sel[a, j, a*hid+j]=1
    o_ref   : (1, G, TN)                 f32  transposed (lane-dense) output tile
    whb_ref : (L, ghid, ghid)            bf16 VMEM scratch: block-diag hidden W
    """
    gh = whb_ref.shape[-1]

    # Assemble the block-diagonal hidden-layer operands once per group.  The
    # row-tile axis is innermost and "arbitrary", so t == 0 always runs before
    # t > 0 of the same group on the same core.
    @pl.when(pl.program_id(1) == 0)
    def _():
        sel = sel_ref[...]                                   # (G, hidden, ghid)
        for l in range(num_hidden_layers):
            blk = whc_ref[0, l]                              # (G, hidden, hidden)
            bd = jax.lax.dot_general(                        # (G, hidden, ghid)
                blk, sel,
                dimension_numbers=(((2,), (1,)), ((0,), (0,))),
                preferred_element_type=jnp.float32)
            whb_ref[l] = bd.reshape(gh, gh).astype(jnp.bfloat16)

    # First layer fused over the whole group: (TN, d) @ (d, ghid).
    xb = x_ref[...].astype(jnp.bfloat16)
    h = jnp.dot(xb, w0_ref[0], preferred_element_type=jnp.float32)
    h = h + b0_ref[0]
    h = jnp.maximum(h, slope * h)            # LeakyReLU (valid for 0 <= slope <= 1)

    # Hidden layers: one dense block-diagonal MXU op per layer.
    for l in range(num_hidden_layers):
        h = jnp.dot(h.astype(jnp.bfloat16), whb_ref[l],
                    preferred_element_type=jnp.float32)
        h = h + bh_ref[0, l]
        h = jnp.maximum(h, slope * h)

    # Final Linear(hidden -> 1) for all G nets, computed transposed so the
    # output store has >=128 lanes: (G, ghid) x (TN, ghid) -> (G, TN).
    out = jax.lax.dot_general(
        wo_ref[0], h.astype(jnp.bfloat16),
        dimension_numbers=(((1,), (1,)), ((), ())),
        preferred_element_type=jnp.float32)
    out = out + bo_ref[0]
    o_ref[0] = out.astype(o_ref.dtype)


# ------------------------------- wrapper ----------------------------------- #

def _target_fused_lanes():
    """128 lanes already saturate v5e's 4x128^2 MXU; 256 for v6e/v7x."""
    try:
        kind = jax.devices()[0].device_kind.lower()
    except Exception:
        return 256
    if "v5 lite" in kind or "v5lite" in kind or "v5e" in kind:
        return 128
    return 256


def _pick_group_size(hidden, target_lanes):
    g = max(1, -(-target_lanes // hidden))
    # Prefer a G such that G*hidden is a multiple of 128 (no wasted MXU lanes),
    # without blowing past ~2x the lane target.
    for cand in range(g, 2 * g + 1):
        if (cand * hidden) % 128 == 0:
            return cand
    return g


def mcsl_pallas(x, w_prime, w_in, b_in, w_hid, b_hid, w_out, b_out,
                *, slope=0.05, nets_per_step=None, row_tile=None):
    """Runs the d masked MLPs of MCSL.forward inside a Pallas kernel.

    x        : (N, d)
    w_prime  : (d, d)                  preprocessed edge probs (mask_i = column i)
    w_in     : (d, d, hidden)          first Linear, stored (in, out) per net
    b_in     : (d, hidden)
    w_hid    : (d, L, hidden, hidden)  L = num_layer - 1 (>= 1)
    b_hid    : (d, L, hidden)
    w_out    : (d, hidden)
    b_out    : (d,)
    returns  : xhat (N, d)
    """
    n, d = x.shape
    hidden = w_in.shape[-1]
    L = w_hid.shape[1]
    # TODO(synk): num_layer == 1 (no hidden->hidden layers) would need the
    # whc/bh inputs and the block-diagonal scratch dropped from the kernel.
    assert L >= 1, "num_layer must be >= 2"

    G = (nets_per_step if nets_per_step is not None
         else _pick_group_size(hidden, _target_fused_lanes()))
    num_groups = -(-d // G)
    d_pad = num_groups * G
    ghid = G * hidden

    # ---- row tiling (bounds VMEM; lane-dense output wants TN % 128 == 0) ----
    TN = row_tile if row_tile is not None else 512
    TN = min(TN, 128 * (-(-n // 128)))
    TN = max(128, (TN // 128) * 128)

    def vmem_estimate(tn):
        est = 2 * tn * d * 4                                      # x (dbl-buf)
        est += 2 * (d * ghid * 2 + ghid * 4)                      # w0 + b0
        est += 2 * (L * G * hidden * hidden * 2 + L * ghid * 4)   # whc + bh
        est += 2 * (G * ghid * 2 + G * 4)                         # wo_t + bo
        est += 2 * G * hidden * ghid * 2                          # sel
        est += 2 * G * tn * 4                                     # out tile
        est += L * ghid * ghid * 2                                # block-diag scratch
        est += 3 * tn * ghid * 4                                  # h + temporaries
        return est

    budget = 40 * 1024 * 1024        # conservative against v7x's 64 MiB VMEM
    while TN > 128 and vmem_estimate(TN) > budget:
        TN -= 128
    vmem_limit = int(min(max(vmem_estimate(TN) + (8 << 20), 16 << 20), 64 << 20))

    n_tiles = -(-n // TN)
    n_pad = n_tiles * TN

    f32, bf16 = jnp.float32, jnp.bfloat16

    # ---- pack per-net weights into per-group tensors (tiny JAX glue) ----
    def pad_nets(a):
        pad = d_pad - d
        if pad == 0:
            return a
        return jnp.pad(a, [(0, pad)] + [(0, 0)] * (a.ndim - 1))   # zero-pad nets

    x_p = jnp.pad(x, ((0, n_pad - n), (0, 0))).astype(f32)

    masks = pad_nets(jnp.transpose(w_prime))        # (d_pad, d): row i = mask of net i
    w_in_p = pad_nets(w_in)
    b_in_p = pad_nets(b_in)
    w_hid_p = pad_nets(w_hid)
    b_hid_p = pad_nets(b_hid)
    w_out_p = pad_nets(w_out)
    b_out_p = pad_nets(b_out)

    # fold the mask: (x * mask_i) @ W_i == x @ (mask_i[:, None] * W_i)
    w0 = (masks[:, :, None] * w_in_p).reshape(num_groups, G, d, hidden)
    w0 = w0.transpose(0, 2, 1, 3).reshape(num_groups, d, ghid).astype(bf16)
    b0 = b_in_p.reshape(num_groups, 1, ghid).astype(f32)

    # COMPACT hidden weights; block diagonal is assembled in VMEM inside the kernel
    whc = w_hid_p.reshape(num_groups, G, L, hidden, hidden)
    whc = whc.transpose(0, 2, 1, 3, 4).astype(bf16)        # (ng, L, G, hid, hid)
    bh = b_hid_p.reshape(num_groups, G, L, hidden).transpose(0, 2, 1, 3)
    bh = bh.reshape(num_groups, L, 1, ghid).astype(f32)

    eye_g = jnp.eye(G, dtype=f32)
    wo_t = (w_out_p.reshape(num_groups, G, 1, hidden) * eye_g[None, :, :, None])
    wo_t = wo_t.reshape(num_groups, G, ghid).astype(bf16)  # (ng, G, ghid)
    bo = b_out_p.reshape(num_groups, G, 1).astype(f32)

    # 0/1 selection tensor: sel[a, j, a*hidden + j] = 1 (group independent, exact in bf16)
    sel = eye_g[:, None, :, None] * jnp.eye(hidden, dtype=f32)[None, :, None, :]
    sel = sel.reshape(G, hidden, ghid).astype(bf16)

    kernel = functools.partial(_mcsl_group_kernel,
                               num_hidden_layers=L, slope=slope)

    out = pl.pallas_call(
        kernel,
        out_shape=jax.ShapeDtypeStruct((num_groups, G, n_pad), jnp.float32),
        grid_spec=pltpu.PrefetchScalarGridSpec(
            num_scalar_prefetch=0,
            grid=(num_groups, n_tiles),            # row-tile axis innermost
            in_specs=[
                pl.BlockSpec((TN, d), lambda g, t: (t, 0)),                              # x
                pl.BlockSpec((1, d, ghid), lambda g, t: (g, 0, 0)),                      # w0
                pl.BlockSpec((1, 1, ghid), lambda g, t: (g, 0, 0)),                      # b0
                pl.BlockSpec((1, L, G, hidden, hidden), lambda g, t: (g, 0, 0, 0, 0)),   # whc
                pl.BlockSpec((1, L, 1, ghid), lambda g, t: (g, 0, 0, 0)),                # bh
                pl.BlockSpec((1, G, ghid), lambda g, t: (g, 0, 0)),                      # wo_t
                pl.BlockSpec((1, G, 1), lambda g, t: (g, 0, 0)),                         # bo
                pl.BlockSpec((G, hidden, ghid), lambda g, t: (0, 0, 0)),                 # sel
            ],
            out_specs=pl.BlockSpec((1, G, TN), lambda g, t: (g, 0, t)),
            scratch_shapes=[pltpu.VMEM((L, ghid, ghid), jnp.bfloat16)],
        ),
        compiler_params=pltpu.CompilerParams(
            # Row-tile axis is "arbitrary": the per-group block-diagonal scratch
            # is assembled at t == 0 and reused for t > 0.
            # TODO(synk): when num_groups == 1 on v7x the second TensorCore
            # idles; per-step (or per-core) assembly would let the row axis be
            # "parallel" too.
            dimension_semantics=("parallel", "arbitrary"),
            vmem_limit_bytes=vmem_limit),
    )(x_p, w0, b0, whc, bh, wo_t, bo, sel)

    # (num_groups, G, n_pad) -> (n, d); padded nets/rows are exact zeros / sliced off.
    xhat = jnp.transpose(out, (2, 0, 1)).reshape(n_pad, d_pad)
    return xhat[:n, :d]


# ------------------------ gumbel-sigmoid preprocessing --------------------- #
# (glue: tiny d x d elementwise math + RNG, kept in plain JAX)

def _sample_gumbel(key, shape, eps=1e-20):
    u = jax.random.uniform(key, shape, dtype=jnp.float32)
    g = -jnp.log(-jnp.log(u + eps) + eps)
    idx = jnp.arange(shape[0])
    return g.at[idx, idx].set(0.0)


def preprocess_graph(key, w, tau):
    k1, k2 = jax.random.split(key)
    sample = w + _sample_gumbel(k1, w.shape) - _sample_gumbel(k2, w.shape)
    w_prob = jax.nn.sigmoid(sample / tau)
    return w_prob * (1.0 - jnp.eye(w.shape[0], dtype=w.dtype))


# -------------------------- pure-JAX reference ----------------------------- #

def mcsl_ref(x, w_prime, w_in, b_in, w_hid, b_hid, w_out, b_out, slope=0.05):
    outs = []
    d = x.shape[1]
    for i in range(d):
        h = x * w_prime[:, i][None, :]
        h = h @ w_in[i] + b_in[i]
        h = jnp.where(h >= 0, h, slope * h)
        for j in range(w_hid.shape[1]):
            h = h @ w_hid[i, j] + b_hid[i, j]
            h = jnp.where(h >= 0, h, slope * h)
        outs.append(h @ w_out[i][:, None] + b_out[i])
    return jnp.concatenate(outs, axis=1)


# ---------------------------------- main ----------------------------------- #

if __name__ == "__main__":
    config = {"d": 10, "num_layer": 2, "hidden_dim": 32, "temperature": 2.0}
    d, num_layer, hidden, tau = (config["d"], config["num_layer"],
                                 config["hidden_dim"], config["temperature"])
    N = 256
    L = num_layer - 1

    key = jax.random.PRNGKey(0)
    (k_x, k_w, k_g, k_wi, k_bi, k_wh, k_bh, k_wo, k_bo) = jax.random.split(key, 9)

    # deterministic parameter init (mimicking nn.Linear's +-1/sqrt(fan_in) range)
    def unif(k, shape, fan_in):
        b = 1.0 / jnp.sqrt(jnp.float32(fan_in))
        return jax.random.uniform(k, shape, jnp.float32, -b, b)

    x = jax.random.normal(k_x, (N, d), dtype=jnp.float32)
    w_logits = jax.random.uniform(k_w, (d, d), jnp.float32, -1e-10, 1e-10)

    w_in = unif(k_wi, (d, d, hidden), d)                 # Linear(d, hidden), (in, out)
    b_in = unif(k_bi, (d, hidden), d)
    w_hid = unif(k_wh, (d, L, hidden, hidden), hidden)   # Linear(hidden, hidden)
    b_hid = unif(k_bh, (d, L, hidden), hidden)
    w_out = unif(k_wo, (d, hidden), hidden)              # Linear(hidden, 1)
    b_out = unif(k_bo, (d,), hidden)

    # forward: w_prime = _preprocess_graph(w); xhat[:, i] = nets[i](x * w_prime[:, i])
    w_prime = preprocess_graph(k_g, w_logits, tau)
    xhat = mcsl_pallas(x, w_prime, w_in, b_in, w_hid, b_hid, w_out, b_out,
                       row_tile=128)   # 128-row tiles -> exercises both grid axes
    xhat = jax.block_until_ready(xhat)
    w_prime = jax.block_until_ready(w_prime)

    # correctness check against the exact f32 pure-JAX reference; tolerance is
    # loosened because the kernel feeds bf16 operands to the MXU (f32 accumulate).
    ref = mcsl_ref(x, w_prime, w_in, b_in, w_hid, b_hid, w_out, b_out)
    assert xhat.shape == (N, d) and w_prime.shape == (d, d)
    max_err = float(jnp.max(jnp.abs(xhat - ref)))
    assert jnp.allclose(xhat, ref, atol=5e-2, rtol=5e-2), (
        f"mismatch vs reference (max |err| = {max_err})")

    print("KERNEL_OK")
</pallas_src>

<mosaic_0001>
module attributes {stable_mosaic.version = 11 : i64} {
  func.func @_mcsl_group_kernel(%arg0: i32, %arg1: i32, %arg2: memref<128x10xf32, #tpu.memory_space<vmem>>, %arg3: memref<1x10x256xbf16, #tpu.memory_space<vmem>>, %arg4: memref<1x1x256xf32, #tpu.memory_space<vmem>>, %arg5: memref<1x1x8x32x32xbf16, #tpu.memory_space<vmem>>, %arg6: memref<1x1x1x256xf32, #tpu.memory_space<vmem>>, %arg7: memref<1x8x256xbf16, #tpu.memory_space<vmem>>, %arg8: memref<1x8x1xf32, #tpu.memory_space<vmem>>, %arg9: memref<8x32x256xbf16, #tpu.memory_space<vmem>>, %arg10: memref<1x8x128xf32, #tpu.memory_space<vmem>>, %arg11: memref<1x256x256xbf16, #tpu.memory_space<vmem>>) attributes {dimension_semantics = [#tpu.dimension_semantics<parallel>, #tpu.dimension_semantics<arbitrary>], iteration_bounds = array<i64: 2, 2>, scalar_prefetch = 0 : i64, scratch_operands = 1 : i64, tpu.core_type = #tpu.core_type<tc>, window_params = [{transform_indices = @transform_0, window_bounds = array<i64: 128, 10>}, {transform_indices = @transform_1, window_bounds = array<i64: 1, 10, 256>}, {transform_indices = @transform_2, window_bounds = array<i64: 1, 1, 256>}, {transform_indices = @transform_3, window_bounds = array<i64: 1, 1, 8, 32, 32>}, {transform_indices = @transform_4, window_bounds = array<i64: 1, 1, 1, 256>}, {transform_indices = @transform_5, window_bounds = array<i64: 1, 8, 256>}, {transform_indices = @transform_6, window_bounds = array<i64: 1, 8, 1>}, {pipeline_mode = #tpu.pipeline_mode<synchronous>, transform_indices = @transform_7, window_bounds = array<i64: 8, 32, 256>}, {transform_indices = @transform_8, window_bounds = array<i64: 1, 8, 128>}]} {
    %c0_i32 = arith.constant 0 : i32
    %0 = arith.cmpi eq, %arg1, %c0_i32 : i32
    %1 = arith.extui %0 : i1 to i32
    %c0_i32_0 = arith.constant 0 : i32
    %2 = arith.cmpi ne, %1, %c0_i32_0 : i32
    scf.if %2 {
      %c0_28 = arith.constant 0 : index
      %c0_29 = arith.constant 0 : index
      %c0_30 = arith.constant 0 : index
      %37 = vector.load %arg9[%c0_28, %c0_29, %c0_30] : memref<8x32x256xbf16, #tpu.memory_space<vmem>>, vector<8x32x256xbf16>
      %c0_31 = arith.constant 0 : index
      %c0_32 = arith.constant 0 : index
      %c0_33 = arith.constant 0 : index
      %c0_34 = arith.constant 0 : index
      %c0_35 = arith.constant 0 : index
      %38 = vector.load %arg5[%c0_31, %c0_32, %c0_33, %c0_34, %c0_35] : memref<1x1x8x32x32xbf16, #tpu.memory_space<vmem>>, vector<1x1x8x32x32xbf16>
      %39 = vector.shape_cast %38 : vector<1x1x8x32x32xbf16> to vector<8x32x32xbf16>
      %cst_36 = arith.constant dense<0.000000e+00> : vector<8x32x256xf32>
      %40 = tpu.matmul %39, %37, %cst_36 {dimension_numbers = #tpu.dot_dimension_numbers<[2], [1], [1], [2], [0, 0, 0, 1, 1, 2], [0], [0]>} : vector<8x32x32xbf16>, vector<8x32x256xbf16>, vector<8x32x256xf32> -> vector<8x32x256xf32>
      %41 = vector.shape_cast %40 : vector<8x32x256xf32> to vector<256x256xf32>
      %42 = arith.truncf %41 : vector<256x256xf32> to vector<256x256xbf16>
      %c0_37 = arith.constant 0 : index
      %c0_38 = arith.constant 0 : index
      %c0_39 = arith.constant 0 : index
      %43 = vector.load %arg11[%c0_37, %c0_38, %c0_39] : memref<1x256x256xbf16, #tpu.memory_space<vmem>>, vector<1x256x256xbf16>
      %44 = vector.shape_cast %43 : vector<1x256x256xbf16> to vector<256x256xbf16>
      %45 = vector.shape_cast %42 : vector<256x256xbf16> to vector<1x256x256xbf16>
      tpu.vector_store %arg11[%c0_37, %c0_38, %c0_39], %45 {strides = array<i32>} : memref<1x256x256xbf16, #tpu.memory_space<vmem>>, vector<1x256x256xbf16>,
    } else {
    }
    %c0 = arith.constant 0 : index
    %c0_1 = arith.constant 0 : index
    %3 = vector.load %arg2[%c0, %c0_1] : memref<128x10xf32, #tpu.memory_space<vmem>>, vector<128x10xf32>
    %4 = arith.truncf %3 : vector<128x10xf32> to vector<128x10xbf16>
    %c0_2 = arith.constant 0 : index
    %c0_3 = arith.constant 0 : index
    %c0_4 = arith.constant 0 : index
    %5 = vector.load %arg3[%c0_2, %c0_3, %c0_4] : memref<1x10x256xbf16, #tpu.memory_space<vmem>>, vector<1x10x256xbf16>
    %6 = vector.shape_cast %5 : vector<1x10x256xbf16> to vector<10x256xbf16>
    %cst = arith.constant dense<0.000000e+00> : vector<128x256xf32>
    %7 = tpu.matmul %4, %6, %cst {dimension_numbers = #tpu.dot_dimension_numbers<[1], [0], [0], [1], [0, 0, 1, 1], [], []>} : vector<128x10xbf16>, vector<10x256xbf16>, vector<128x256xf32> -> vector<128x256xf32>
    %c0_5 = arith.constant 0 : index
    %c0_6 = arith.constant 0 : index
    %c0_7 = arith.constant 0 : index
    %8 = vector.load %arg4[%c0_5, %c0_6, %c0_7] : memref<1x1x256xf32, #tpu.memory_space<vmem>>, vector<1x1x256xf32>
    %9 = vector.shape_cast %8 : vector<1x1x256xf32> to vector<1x256xf32>
    %10 = vector.broadcast %9 : vector<1x256xf32> to vector<128x256xf32>
    %11 = arith.addf %7, %10 : vector<128x256xf32>
    %cst_8 = arith.constant 5.000000e-02 : f32
    %12 = vector.broadcast %cst_8 : f32 to vector<128x256xf32>
    %13 = arith.mulf %12, %11 : vector<128x256xf32>
    %14 = arith.maximumf %11, %13 : vector<128x256xf32>
    %15 = arith.truncf %14 : vector<128x256xf32> to vector<128x256xbf16>
    %c0_9 = arith.constant 0 : index
    %c0_10 = arith.constant 0 : index
    %c0_11 = arith.constant 0 : index
    %16 = vector.load %arg11[%c0_9, %c0_10, %c0_11] : memref<1x256x256xbf16, #tpu.memory_space<vmem>>, vector<1x256x256xbf16>
    %17 = vector.shape_cast %16 : vector<1x256x256xbf16> to vector<256x256xbf16>
    %cst_12 = arith.constant dense<0.000000e+00> : vector<128x256xf32>
    %18 = tpu.matmul %15, %17, %cst_12 {dimension_numbers = #tpu.dot_dimension_numbers<[1], [0], [0], [1], [0, 0, 1, 1], [], []>} : vector<128x256xbf16>, vector<256x256xbf16>, vector<128x256xf32> -> vector<128x256xf32>
    %c0_13 = arith.constant 0 : index
    %c0_14 = arith.constant 0 : index
    %c0_15 = arith.constant 0 : index
    %c0_16 = arith.constant 0 : index
    %19 = vector.load %arg6[%c0_13, %c0_14, %c0_15, %c0_16] : memref<1x1x1x256xf32, #tpu.memory_space<vmem>>, vector<1x1x1x256xf32>
    %20 = vector.shape_cast %19 : vector<1x1x1x256xf32> to vector<1x256xf32>
    %21 = vector.broadcast %20 : vector<1x256xf32> to vector<128x256xf32>
    %22 = arith.addf %18, %21 : vector<128x256xf32>
    %cst_17 = arith.constant 5.000000e-02 : f32
    %23 = vector.broadcast %cst_17 : f32 to vector<128x256xf32>
    %24 = arith.mulf %23, %22 : vector<128x256xf32>
    %25 = arith.maximumf %22, %24 : vector<128x256xf32>
    %c0_18 = arith.constant 0 : index
    %c0_19 = arith.constant 0 : index
    %c0_20 = arith.constant 0 : index
    %26 = vector.load %arg7[%c0_18, %c0_19, %c0_20] : memref<1x8x256xbf16, #tpu.memory_space<vmem>>, vector<1x8x256xbf16>
    %27 = vector.shape_cast %26 : vector<1x8x256xbf16> to vector<8x256xbf16>
    %28 = arith.truncf %25 : vector<128x256xf32> to vector<128x256xbf16>
    %cst_21 = arith.constant dense<0.000000e+00> : vector<8x128xf32>
    %29 = tpu.matmul %27, %28, %cst_21 {dimension_numbers = #tpu.dot_dimension_numbers<[1], [1], [0], [0], [0, 0, 1, 0], [], []>} : vector<8x256xbf16>, vector<128x256xbf16>, vector<8x128xf32> -> vector<8x128xf32>
    %c0_22 = arith.constant 0 : index
    %c0_23 = arith.constant 0 : index
    %c0_24 = arith.constant 0 : index
    %30 = vector.load %arg8[%c0_22, %c0_23, %c0_24] : memref<1x8x1xf32, #tpu.memory_space<vmem>>, vector<1x8x1xf32>
    %31 = vector.shape_cast %30 : vector<1x8x1xf32> to vector<8x1xf32>
    %32 = vector.broadcast %31 : vector<8x1xf32> to vector<8x128xf32>
    %33 = arith.addf %29, %32 : vector<8x128xf32>
    %c0_25 = arith.constant 0 : index
    %c0_26 = arith.constant 0 : index
    %c0_27 = arith.constant 0 : index
    %34 = vector.load %arg10[%c0_25, %c0_26, %c0_27] : memref<1x8x128xf32, #tpu.memory_space<vmem>>, vector<1x8x128xf32>
    %35 = vector.shape_cast %34 : vector<1x8x128xf32> to vector<8x128xf32>
    %36 = vector.shape_cast %33 : vector<8x128xf32> to vector<1x8x128xf32>
    tpu.vector_store %arg10[%c0_25, %c0_26, %c0_27], %36 {strides = array<i32>} : memref<1x8x128xf32, #tpu.memory_space<vmem>>, vector<1x8x128xf32>,
    return
  }
  func.func @transform_0(%arg0: i32, %arg1: i32) -> (i32, i32) {
    %c0_i32 = arith.constant 0 : i32
    %c0_i32_0 = arith.constant 0 : i32
    return %arg1, %c0_i32 : i32, i32
  }
  func.func @transform_1(%arg0: i32, %arg1: i32) -> (i32, i32, i32) {
    %c0_i32 = arith.constant 0 : i32
    %c0_i32_0 = arith.constant 0 : i32
    %c0_i32_1 = arith.constant 0 : i32
    return %arg0, %c0_i32, %c0_i32_0 : i32, i32, i32
  }
  func.func @transform_2(%arg0: i32, %arg1: i32) -> (i32, i32, i32) {
    %c0_i32 = arith.constant 0 : i32
    %c0_i32_0 = arith.constant 0 : i32
    %c0_i32_1 = arith.constant 0 : i32
    return %arg0, %c0_i32, %c0_i32_0 : i32, i32, i32
  }
  func.func @transform_3(%arg0: i32, %arg1: i32) -> (i32, i32, i32, i32, i32) {
    %c0_i32 = arith.constant 0 : i32
    %c0_i32_0 = arith.constant 0 : i32
    %c0_i32_1 = arith.constant 0 : i32
    %c0_i32_2 = arith.constant 0 : i32
    %c0_i32_3 = arith.constant 0 : i32
    return %arg0, %c0_i32, %c0_i32_0, %c0_i32_1, %c0_i32_2 : i32, i32, i32, i32, i32
  }
  func.func @transform_4(%arg0: i32, %arg1: i32) -> (i32, i32, i32, i32) {
    %c0_i32 = arith.constant 0 : i32
    %c0_i32_0 = arith.constant 0 : i32
    %c0_i32_1 = arith.constant 0 : i32
    %c0_i32_2 = arith.constant 0 : i32
    return %arg0, %c0_i32, %c0_i32_0, %c0_i32_1 : i32, i32, i32, i32
  }
  func.func @transform_5(%arg0: i32, %arg1: i32) -> (i32, i32, i32) {
    %c0_i32 = arith.constant 0 : i32
    %c0_i32_0 = arith.constant 0 : i32
    %c0_i32_1 = arith.constant 0 : i32
    return %arg0, %c0_i32, %c0_i32_0 : i32, i32, i32
  }
  func.func @transform_6(%arg0: i32, %arg1: i32) -> (i32, i32, i32) {
    %c0_i32 = arith.constant 0 : i32
    %c0_i32_0 = arith.constant 0 : i32
    %c0_i32_1 = arith.constant 0 : i32
    return %arg0, %c0_i32, %c0_i32_0 : i32, i32, i32
  }
  func.func @transform_7(%arg0: i32, %arg1: i32) -> (i32, i32, i32) {
    %c0_i32 = arith.constant 0 : i32
    %c0_i32_0 = arith.constant 0 : i32
    %c0_i32_1 = arith.constant 0 : i32
    %c0_i32_2 = arith.constant 0 : i32
    return %c0_i32, %c0_i32_0, %c0_i32_1 : i32, i32, i32
  }
  func.func @transform_8(%arg0: i32, %arg1: i32) -> (i32, i32, i32) {
    %c0_i32 = arith.constant 0 : i32
    %c0_i32_0 = arith.constant 0 : i32
    return %arg0, %c0_i32, %arg1 : i32, i32, i32
  }
}

</mosaic_0001>

<bundles_post_ra>
// kernel: tpu_custom_call.1
= control target key start
LH: loop header
LB: loop body
LE: loop exit
PB: predicated region body
PF: predicated region fallthrough
CT: control target
= control target key end

     0   :  { %s2862_s0 = inlined_call_operand.vmem [shape: f32[256,10], index: 0, kind: input, shape index: {}]   ;;  %s2863_s1 = inlined_call_operand.vmem [shape: bf16[2,10,256], index: 1, kind: input, shape index: {}]   ;;  %s2864_s2 = inlined_call_operand.vmem [shape: f32[2,1,256], index: 2, kind: input, shape index: {}]   ;;  %s2865_s3 = inlined_call_operand.vmem [shape: bf16[2,1,8,32,32], index: 3, kind: input, shape index: {}]   ;;  %s2866_s4 = inlined_call_operand.vmem [shape: f32[2,1,1,256], index: 4, kind: input, shape index: {}]   ;;  %s2867_s5 = inlined_call_operand.vmem [shape: bf16[2,8,256], index: 5, kind: input, shape index: {}]   ;;  %s2868_s6 = inlined_call_operand.vmem [shape: f32[2,8,1], index: 6, kind: input, shape index: {}]   ;;  %s2869_s7 = inlined_call_operand.hbm [shape: bf16[8,32,256], index: 7, kind: input, shape index: {}]   ;;  %s2870_s8 = inlined_call_operand.hbm [shape: f32[2,8,256], index: 8, kind: output, shape index: {}]  }
   0x1   :  { %2883 = sst [smem:[#allocation17_spill]] %s2862_s0 }
   0x2   :  { %2884 = sst [smem:[#allocation18_spill]] %s2863_s1 }
   0x3   :  { %2885 = sst [smem:[#allocation19_spill]] %s2864_s2 }
   0x4   :  { %2886 = sst [smem:[#allocation20_spill]] %s2869_s7 }
   0x5   :  { %13 = vsyncpa [#allocation4], 0 }
   0x6   :  { %14 = vsyncpa [#allocation5], 0 }
   0x7   :  { %16 = vsyncpa [#allocation5 + $0x1], 0  ;;  %s2467_s27 = smov 0   ;;  %s2469_s28 = smov 0  }
   0x8   :  { %s2471_s29 = smov 0   ;;  %s2473_s30 = smov 0  }
   0x9   :  { %s2475_s9 = smov 0   ;;  %s2477_s10 = smov 0  }
   0xa   :  { %s2479_s11 = smov 0   ;;  %s2481_s12 = smov 0  }
   0xb LB: > { %2887 = sst [smem:[#allocation9_spill]] %s2386_s27  ;;  %s2027_s13 = sadd.s32 4294967295, %s2414_s12   ;;  %s2414_s12 = sphi %s2481_s12, %s22_s12   ;;  %s2410_s11 = sphi %s2479_s11, %s2916_s11   ;;  %s2406_s10 = sphi %s2477_s10, %s2915_s10   ;;  %s2402_s9 = sphi %s2475_s9, %s2914_s9   ;;  %s2398_s30 = sphi %s2473_s30, %s2913_s30   ;;  %s2394_s29 = sphi %s2471_s29, %s2912_s29   ;;  %s2390_s28 = sphi %s2469_s28, %s2918_s28   ;;  %s2386_s27 = sphi %s2467_s27, %s2917_s27  }
   0xc   : > { %2888 = sst [smem:[#allocation10_spill]] %s2394_s29  ;;  %s2028_s14 = sadd.s32 4294967294, %s2414_s12  }
   0xd   : > { %2889 = sst [smem:[#allocation11_spill]] %s2406_s10  ;;  %s31_s15 = sadd.s32 1, %s2406_s10 }
   0xe   : > { %2890 = sst [smem:[#allocation12_spill]] %s2410_s11  ;;  %s34_s16 = sadd.s32 1, %s2410_s11 }
   0xf   : > { %p32_p0 = scmp.ge.s32.totalorder %s31_s15, 2  ;;  %s246_s17 = sadd.s32 1, %s2394_s29 }
  0x10   : > { %p256_p1 = scmp.ne.s32.totalorder %s2394_s29, %s2390_s28  ;;  %p257_p2 = scmp.eq.s32.totalorder %s2027_s13, 3 }
  0x11   : > { %s2920_s15 = smov (%p32_p0, %s31_s15), 0  ;;  %s2922_s16 = smov (!%p32_p0, %s34_s16), %s2410_s11 }
  0x12   : > { %2891 = sst [smem:[#allocation13_spill]] %s2920_s15  ;;  %s242_s18 = ssub.s32 %s2406_s10, %s2920_s15 }
  0x13   : > { %p2519_p3 = por %p257_p2, %p256_p1  ;;  %p36_p4 = scmp.ge.s32.totalorder %s2922_s16, 2 }
  0x14   : > { %p262_p5 = scmp.ne.s32.totalorder %s2390_s28, %s2386_s27  ;;  %p263_p6 = scmp.eq.s32.totalorder %s2028_s14, 3 }
  0x15   : > { %s2892_s19 = scalar_select %p2519_p3, 1, 0 }
  0x16   : > { %p2029_p7 = scmp.ge.s32.totalorder %s2414_s12, 1  ;;  %s2924_s16 = smov (%p36_p4, %s2922_s16), 0 }
  0x17   : > { %2893 = sst [smem:[#allocation14_spill]] %s2924_s16  ;;  %p2528_p8 = por %p263_p6, %p262_p5 }
  0x18   : > { %p270_p9 = scmp.lt.s32.totalorder %s2414_s12, 5  ;;  %s241_s21 = ssub.s32 %s2410_s11, %s2924_s16 }
  0x19   : > { %s2894_s20 = scalar_select %p2528_p8, 1, 0 }
  0x1a   : > { %s243_s22 = sor.u32 %s242_s18, %s241_s21  ;;  %p2535_p10 = pnand %p2029_p7, %p270_p9 }
  0x1b   : > { %2895 = sst [smem:[#allocation15_spill]] %s2894_s20  ;;  %p244_p11 = scmp.eq.s32.totalorder %s243_s22, 0 }
  0x1c   : > { %s2896_s23 = scalar_select %p2535_p10, 1, 0 }
  0x1d   : > { %p2539_p12 = scmp.eq.s32.totalorder %s2027_s13, 0  ;;  %p2138_p13 = pneg %p2535_p10 }
  0x1e   : > { %s2546_s25 = scalar_select %p244_p11, %s2394_s29, %s246_s17  }
  0x1f   : > { %s2897_s24 = scalar_select %p2539_p12, 1, 0 }
  0x20   : > { %2898 = sst [smem:[#allocation16_spill]] %s2546_s25  ;;  %s2416_s26 = smov [#allocation3]  }
  0x21   : > { %s282_s14 = sshll.u32 %s2416_s26, 4  ;;  %p2550_p0 = pnand %p2539_p12, %p2138_p13  ;;  %s283_s14 = int_to_ptr.vmem [resolvable:$true] %s282_s14 }
  0x22   : > { %s2900_s7 = sld [smem:[#allocation20_spill]] }
  0x23   : > { %p2290_p2 = pneg %p2550_p0 }
  0x28   : > { %s2288_s13 = scalar_lea.hbm %s2900_s7, 4096 }
  0x29   : > { %p2289_p1 = scmp.ne.s32.totalorder %s2900_s7, %s2288_s13  ;;  %p2295_p6 = scmp.lt.u32.totalorder %s2288_s13, %s2900_s7 }
  0x2b   : > { %p2291_p4 = pnand %p2290_p2, %p2289_p1 }
  0x2d   : > { %p2292_p5 = pneg %p2291_p4 }
  0x2f   : > { %p2297_p7 = pnand %p2295_p6, %p2292_p5 }
  0x31   : > { %2300 = shalt.err (!%p2297_p7)
}
  0x32   : > { %s2301_s11 = scalar_lea.vmem %s283_s14, 4096  ;;  %p2309_p8 = scmp.lt.s32.totalorder %s283_s14, %s283_s14 }
  0x33   : > { %p2302_p9 = scmp.ne.s32.totalorder %s283_s14, %s2301_s11  ;;  %p2310_p3 = scmp.lt.s32.totalorder %s2301_s11, %s2301_s11 }
  0x35   : > { %p2304_p11 = pnand %p2302_p9, %p2290_p2  ;;  %p2311_p12 = por %p2310_p3, %p2309_p8 }
  0x37   : > { %p2305_p13 = pneg %p2304_p11 }
  0x39   : > { %p2312_p10 = pnand %p2311_p12, %p2305_p13 }
  0x3b   : > { %2315 = shalt.err (!%p2312_p10)
}
  0x3c   : > { %s2417_s15 = smov 128   ;;  %s2418_s16 = smov 8  }
  0x3d   : > { %2141 = dma.hbm_to_vmem [thread:$0]  (!%p2550_p0), %s2900_s7, 4096, %s283_s14, [#allocation4], %s2417_s15, %s2417_s15, %s2418_s16  }
  0x3e   : > { %p2901_p1 = scmp.ne.s32.totalorder %s2896_s23, 0 }
  0x3f   : > { %p2902_p4 = scmp.ne.s32.totalorder (!%p2901_p1), %s2897_s24, 0 }
  0x40   : > { %352 = sbr.rel (%p2901_p1) target bundleno = 1114 (0x45a), region = 52 }
  0x47   : > { %2377 = dma.done.wait (%p2902_p4), [#allocation4], 4096  }
  0x48   : > { %2379 = vsyncadd (%p2902_p4), [#allocation4], 4294963200  ;;  %s2878_s11 = sand.u32 1, %s2390_s28   ;;  %s2035_s18 = sshll.u32 %s2398_s30, 4 }
  0x49   : > { %s2580_s13 = sshll.u32 %s2878_s11, 3  ;;  %p414_p3 = scmp.lt.s32.totalorder %s2035_s18, 31 }
  0x4a   : > { %p419_p8 = scmp.lt.s32.totalorder %s2402_s9, 1  ;;  %s2903_s0 = sld [smem:[#allocation17_spill]] }
  0x4b   : > { %s2926_s18 = smov (!%p414_p3, %s2035_s18), 31  ;;  %s2904_s1 = sld [smem:[#allocation18_spill]] }
  0x4c   : > { %s420_s23 = scalar_select %p419_p8, %s2402_s9, 1 }
  0x4d   : > { %s2036_s14 = sshll.u32 %s2926_s18, 3  ;;  %s2905_s2 = sld [smem:[#allocation19_spill]] }
  0x4e   : > { %s2129_s15 = sshll.u32 %s420_s23, 4  ;;  %s2039_s7 = sshll.u32 %s420_s23, 1 }
  0x4f   : > { %s2130_s29 = sshll.u32 %s420_s23, 7  ;;  %s2607_s26 = scalar_lea.vmem %s2866_s4, %s2039_s7 }
  0x50   : > { %s2587_s24 = scalar_lea.vmem %s2903_s0, %s2036_s14  ;;  %s2602_s27 = scalar_lea.vmem %s2865_s3, %s2130_s29 }
  0x51   : > { %s2592_s22 = scalar_lea.vmem %s2904_s1, %s2129_s15  ;;  %s2131_s16 = sshll.u32 %s420_s23, 3 }
  0x52   : > { %s2612_s0 = scalar_lea.vmem %s2867_s5, %s2131_s16  ;;  %s2617_s1 = scalar_lea.vmem %s2868_s6, %s2131_s16 }
  0x53   : > { %s2597_s25 = scalar_lea.vmem %s2905_s2, %s2039_s7  ;;  %s412_s2 = scalar_lea.vmem [#allocation6], %s2580_s13 }
  0x54   : > { %p2046_p10 = scmp.ne.s32.totalorder %s2398_s30, 0 }
  0x55   : > { %v2218_v0 = vld [vmem:[#allocation3 + $0x4] ss:$8 sps:$4 sm:$0xff] (!%p2046_p10)   ;;  %v2419_v2 = vmov (!%p2046_p10), 0   ;;  %v2222_v3 = vld [vmem:[#allocation3] ss:$8 sps:$4 sm:$0xff] (!%p2046_p10)   ;;  %v2231_v10 = vld [vmem:[%s2602_s27 + $0x10] sm:$0xff] (!%p2046_p10)  }
  0x56   : > { %450 = sbr.rel (%p2046_p10) target bundleno = 369 (0x171), region = 60  ;;  %v2220_v1 = vld [vmem:[#allocation3 + $0x24] ss:$8 sps:$4 sm:$0xff] (!%p2046_p10)   ;;  %584 = vmatprep.mubr.bf16.mxu0 (!%p2046_p10), %v2419_v2  ;;  %673 = vmatprep.mubr.bf16.mxu1 (!%p2046_p10), %v2419_v2  ;;  %v2223_v4 = vld [vmem:[#allocation3 + $0x20] ss:$8 sps:$4 sm:$0xff] (!%p2046_p10)   ;;  %vm545_vm0 = vcmask (!%p2046_p10), 261120  }
  0x57   : > { %552 = vmatprep.subr.bf16.mxu0 (!%p2046_p10), %v2218_v0  ;;  %641 = vmatprep.subr.bf16.mxu1 (!%p2046_p10), %v2220_v1  ;;  %v2224_v5 = vld [vmem:[#allocation3 + $0x14] ss:$8 sps:$4 sm:$0xff] (!%p2046_p10)   ;;  %v2228_v7 = vld [vmem:[#allocation3 + $0x10] ss:$8 sps:$4 sm:$0xff] (!%p2046_p10)   ;;  %v2230_v9 = vld [vmem:[%s2602_s27] sm:$0xff] (!%p2046_p10)  }
  0x58   : > { %553 = vmatpush1.bf16.msra.mxu0 (!%p2046_p10), %v2222_v3  ;;  %642 = vmatpush1.bf16.msra.mxu1 (!%p2046_p10), %v2223_v4  ;;  %v2226_v6 = vld [vmem:[#allocation3 + $0x34] ss:$8 sps:$4 sm:$0xff] (!%p2046_p10)   ;;  %v2229_v8 = vld [vmem:[#allocation3 + $0x30] ss:$8 sps:$4 sm:$0xff] (!%p2046_p10)   ;;  %v2232_v11 = vld [vmem:[#allocation3 + $0x40] ss:$8 sps:$4 sm:$0xff] (!%p2046_p10)  }
  0x59   : > { %554 = vmatprep.subr.bf16.mxu0 (!%p2046_p10), %v2224_v5  ;;  %643 = vmatprep.subr.bf16.mxu1 (!%p2046_p10), %v2226_v6  ;;  %v2234_v12 = vld [vmem:[#allocation3 + $0x44] ss:$8 sps:$4 sm:$0xff] (!%p2046_p10)   ;;  %v2235_v13 = vld [vmem:[#allocation3 + $0x60] ss:$8 sps:$4 sm:$0xff] (!%p2046_p10)   ;;  %v2240_v15 = vld [vmem:[#allocation3 + $0x50] ss:$8 sps:$4 sm:$0xff] (!%p2046_p10)  }
  0x5a   : > { %v2237_v14 = vld [vmem:[#allocation3 + $0x64] ss:$8 sps:$4 sm:$0xff] (!%p2046_p10)   ;;  %v2242_v17 = vld [vmem:[#allocation3 + $0x54] ss:$8 sps:$4 sm:$0xff] (!%p2046_p10)   ;;  %v2243_v18 = vld [vmem:[#allocation3 + $0x70] ss:$8 sps:$4 sm:$0xff] (!%p2046_p10)  }
  0x5b   : > { %v2238_v16 = vld [vmem:[%s2602_s27 + $0x8] sm:$0xff] (!%p2046_p10)   ;;  %v2245_v19 = vld [vmem:[#allocation3 + $0x74] ss:$8 sps:$4 sm:$0xff] (!%p2046_p10)   ;;  %v2246_v23 = vld [vmem:[%s2602_s27 + $0x20] sm:$0xff] (!%p2046_p10)  }
  0x5c   : > { %555 = vmatpush1.bf16.msra.mxu0 (!%p2046_p10), %v2228_v7  ;;  %644 = vmatpush1.bf16.msra.mxu1 (!%p2046_p10), %v2229_v8  ;;  %v2239_v20 = vld [vmem:[%s2602_s27 + $0x18] sm:$0xff] (!%p2046_p10)   ;;  %v2250_v21 = vld [vmem:[#allocation3 + $0x84] ss:$8 sps:$4 sm:$0xff] (!%p2046_p10)   ;;  %v2247_v24 = vld [vmem:[%s2602_s27 + $0x30] sm:$0xff] (!%p2046_p10)  }
  0x5d   : > { %730 = vmatprep.subr.bf16.mxu0 %v2234_v12  ;;  %819 = vmatprep.subr.bf16.mxu1 %v2237_v14  ;;  %v2253_v22 = vld [vmem:[#allocation3 + $0xa4] ss:$8 sps:$4 sm:$0xff]   ;;  %v2248_v25 = vld [vmem:[#allocation3 + $0x80] ss:$8 sps:$4 sm:$0xff]   ;;  %v2258_v27 = vld [vmem:[#allocation3 + $0x94] ss:$8 sps:$4 sm:$0xff]  }
  0x5e   : > { %v2251_v26 = vld [vmem:[#allocation3 + $0xa0] ss:$8 sps:$4 sm:$0xff]   ;;  %v2261_v28 = vld [vmem:[#allocation3 + $0xb4] ss:$8 sps:$4 sm:$0xff]   ;;  %v2256_v29 = vld [vmem:[#allocation3 + $0x90] ss:$8 sps:$4 sm:$0xff]  }
  0x5f   : > { %2053 = vmatmul.mubr.msk.bf16.vlgmr.msra.gmra.mrb[0].mxu0 %vm545_vm0, %v2230_v9  ;;  %2061 = vmatmul.mubr.msk.bf16.vlgmr.msra.gmra.mrb[0].mxu1 %vm545_vm0, %v2231_v10  ;;  %v2259_v30 = vld [vmem:[#allocation3 + $0xb0] ss:$8 sps:$4 sm:$0xff]   ;;  %v2266_v31 = vld [vmem:[#allocation3 + $0xc4] ss:$8 sps:$4 sm:$0xff]   ;;  %v2264_v37 = vld [vmem:[#allocation3 + $0xc0] ss:$8 sps:$4 sm:$0xff]  }
  0x60   : > { %731 = vmatpush1.bf16.msra.mxu0 %v2232_v11  ;;  %820 = vmatpush1.bf16.msra.mxu1 %v2235_v13  ;;  %v2269_v32 = vld [vmem:[#allocation3 + $0xe4] ss:$8 sps:$4 sm:$0xff]   ;;  %v2255_v34 = vld [vmem:[%s2602_s27 + $0x38] sm:$0xff]   ;;  %v2263_v36 = vld [vmem:[%s2602_s27 + $0x50] sm:$0xff]  }
  0x61   : > { %594 = vmatprep.mubr.bf16.mxu0 %v2419_v2  ;;  %683 = vmatprep.mubr.bf16.mxu1 %v2419_v2  ;;  %v2254_v33 = vld [vmem:[%s2602_s27 + $0x28] sm:$0xff]   ;;  %v2262_v35 = vld [vmem:[%s2602_s27 + $0x40] sm:$0xff]   ;;  %v2274_v39 = vld [vmem:[#allocation3 + $0xd4] ss:$8 sps:$4 sm:$0xff]  }
  0x62   : > { %732 = vmatprep.subr.bf16.mxu0 %v2242_v17  ;;  %821 = vmatprep.subr.bf16.mxu1 %v2245_v19  ;;  %v2267_v38 = vld [vmem:[#allocation3 + $0xe0] ss:$8 sps:$4 sm:$0xff]   ;;  %v2277_v40 = vld [vmem:[#allocation3 + $0xf4] ss:$8 sps:$4 sm:$0xff]   ;;  %v2272_v41 = vld [vmem:[#allocation3 + $0xd0] ss:$8 sps:$4 sm:$0xff]  }
  0x63   : > { %v2275_v42 = vld [vmem:[#allocation3 + $0xf0] ss:$8 sps:$4 sm:$0xff]   ;;  %v2270_v43 = vld [vmem:[%s2602_s27 + $0x48] sm:$0xff]   ;;  %v2278_v45 = vld [vmem:[%s2602_s27 + $0x60] sm:$0xff]  }
  0x64   : > { %733 = vmatpush1.bf16.msra.mxu0 %v2240_v15  ;;  %822 = vmatpush1.bf16.msra.mxu1 %v2243_v18  ;;  %v2271_v44 = vld [vmem:[%s2602_s27 + $0x58] sm:$0xff]   ;;  %v2279_v46 = vld [vmem:[%s2602_s27 + $0x70] sm:$0xff]   ;;  %v2280_v47 = vld [vmem:[%s2602_s27 + $0x68] sm:$0xff]  }
  0x65   : > { %908 = vmatprep.subr.bf16.mxu0 %v2250_v21  ;;  %997 = vmatprep.subr.bf16.mxu1 %v2253_v22  ;;  %v2281_v48 = vld [vmem:[%s2602_s27 + $0x78] sm:$0xff]  }
  0x67   : > { %2054 = vmatmul.mubr.msk.bf16.gmra.mrb[4].mxu0 %vm545_vm0, %v2238_v16  ;;  %2062 = vmatmul.mubr.msk.bf16.gmra.mrb[4].mxu1 %vm545_vm0, %v2239_v20 }
  0x68   : > { %762 = vmatprep.mubr.bf16.mxu0 %v2419_v2  ;;  %851 = vmatprep.mubr.bf16.mxu1 %v2419_v2 }
  0x6f   : > { %2069 = vmatmul.mubr.msk.bf16.vlgmr.msra.gmra.mrb[8].mxu0 %vm545_vm0, %v2246_v23  ;;  %2077 = vmatmul.mubr.msk.bf16.vlgmr.msra.gmra.mrb[8].mxu1 %vm545_vm0, %v2247_v24 }
  0x70   : > { %909 = vmatpush1.bf16.msra.mxu0 %v2248_v25  ;;  %998 = vmatpush1.bf16.msra.mxu1 %v2251_v26 }
  0x71   : > { %772 = vmatprep.mubr.bf16.mxu0 %v2419_v2  ;;  %861 = vmatprep.mubr.bf16.mxu1 %v2419_v2 }
  0x72   : > { %910 = vmatprep.subr.bf16.mxu0 %v2258_v27  ;;  %999 = vmatprep.subr.bf16.mxu1 %v2261_v28 }
  0x74   : > { %911 = vmatpush1.bf16.msra.mxu0 %v2256_v29  ;;  %1000 = vmatpush1.bf16.msra.mxu1 %v2259_v30 }
  0x75   : > { %1086 = vmatprep.subr.bf16.mxu0 %v2266_v31  ;;  %1175 = vmatprep.subr.bf16.mxu1 %v2269_v32 }
  0x77   : > { %2070 = vmatmul.mubr.msk.bf16.gmra.mrb[12].mxu0 %vm545_vm0, %v2254_v33  ;;  %2078 = vmatmul.mubr.msk.bf16.gmra.mrb[12].mxu1 %vm545_vm0, %v2255_v34 }
  0x78   : > { %940 = vmatprep.mubr.bf16.mxu0 %v2419_v2  ;;  %1029 = vmatprep.mubr.bf16.mxu1 %v2419_v2 }
  0x7f   : > { %2085 = vmatmul.mubr.msk.bf16.vlgmr.msra.gmra.mrb[16].mxu0 %vm545_vm0, %v2262_v35  ;;  %2093 = vmatmul.mubr.msk.bf16.vlgmr.msra.gmra.mrb[16].mxu1 %vm545_vm0, %v2263_v36 }
  0x80   : > { %1087 = vmatpush1.bf16.msra.mxu0 %v2264_v37  ;;  %1176 = vmatpush1.bf16.msra.mxu1 %v2267_v38 }
  0x81   : > { %950 = vmatprep.mubr.bf16.mxu0 %v2419_v2  ;;  %1039 = vmatprep.mubr.bf16.mxu1 %v2419_v2 }
  0x82   : > { %1088 = vmatprep.subr.bf16.mxu0 %v2274_v39  ;;  %1177 = vmatprep.subr.bf16.mxu1 %v2277_v40 }
  0x84   : > { %1089 = vmatpush1.bf16.msra.mxu0 %v2272_v41  ;;  %1178 = vmatpush1.bf16.msra.mxu1 %v2275_v42 }
  0x87   : > { %2086 = vmatmul.mubr.msk.bf16.gmra.mrb[20].mxu0 %vm545_vm0, %v2270_v43  ;;  %2094 = vmatmul.mubr.msk.bf16.gmra.mrb[20].mxu1 %vm545_vm0, %v2271_v44 }
  0x88   : > { %1118 = vmatprep.mubr.bf16.mxu0 %v2419_v2  ;;  %1207 = vmatprep.mubr.bf16.mxu1 %v2419_v2 }
  0x8f   : > { %2101 = vmatmul.mubr.msk.bf16.vlgmr.msra.gmra.mrb[24].mxu0 %vm545_vm0, %v2278_v45  ;;  %2109 = vmatmul.mubr.msk.bf16.vlgmr.msra.gmra.mrb[24].mxu1 %vm545_vm0, %v2279_v46 }
  0x90   : > { %1128 = vmatprep.mubr.bf16.mxu0 %v2419_v2  ;;  %1217 = vmatprep.mubr.bf16.mxu1 %v2419_v2 }
  0x97   : > { %2102 = vmatmul.mubr.msk.bf16.gmra.mrb[28].mxu0 %vm545_vm0, %v2280_v47  ;;  %2110 = vmatmul.mubr.msk.bf16.gmra.mrb[28].mxu1 %vm545_vm0, %v2281_v48 }
 0x132   : > { %v586_v49 = vpop.f32.mrb[0].mxu0  ;;  %v675_v50 = vpop.f32.mrb[0].mxu1 }
 0x133   : > { %v588_v51 = vpop.f32.mrb[1].mxu0  ;;  %v677_v52 = vpop.f32.mrb[1].mxu1 }
 0x134   : > { %v590_v53 = vpop.f32.mrb[2].mxu0  ;;  %v679_v54 = vpop.f32.mrb[2].mxu1 }
 0x135   : > { %v1228_v55 = vpack.c.bf16 %v590_v53, %v586_v49  ;;  %v1232_v56 = vpack.c.bf16 %v679_v54, %v675_v50  ;;  %v592_v57 = vpop.f32.mrb[3].mxu0  ;;  %v681_v58 = vpop.f32.mrb[3].mxu1 }
 0x136   : > { %v1229_v59 = vpack.c.bf16 %v592_v57, %v588_v51  ;;  %v1233_v60 = vpack.c.bf16 %v681_v58, %v677_v52 }
 0x137   : > { %1260 = vst [vmem:[#allocation2] sm:$0xff] %v1228_v55  ;;  %1264 = vst [vmem:[#allocation2 + $0x20] sm:$0xff] %v1232_v56 }
 0x138   : > { %1261 = vst [vmem:[#allocation2 + $0x8] sm:$0xff] %v1229_v59  ;;  %1265 = vst [vmem:[#allocation2 + $0x28] sm:$0xff] %v1233_v60 }
 0x13a   : > { %v596_v61 = vpop.f32.mrb[4].mxu0  ;;  %v685_v62 = vpop.f32.mrb[4].mxu1 }
 0x13b   : > { %v598_v63 = vpop.f32.mrb[5].mxu0  ;;  %v687_v0 = vpop.f32.mrb[5].mxu1 }
 0x13c   : > { %v600_v1 = vpop.f32.mrb[6].mxu0  ;;  %v689_v2 = vpop.f32.mrb[6].mxu1 }
 0x13d   : > { %v1230_v3 = vpack.c.bf16 %v600_v1, %v596_v61  ;;  %v1234_v4 = vpack.c.bf16 %v689_v2, %v685_v62  ;;  %v602_v5 = vpop.f32.mrb[7].mxu0  ;;  %v691_v6 = vpop.f32.mrb[7].mxu1 }
 0x13e   : > { %v1231_v7 = vpack.c.bf16 %v602_v5, %v598_v63  ;;  %v1235_v8 = vpack.c.bf16 %v691_v6, %v687_v0 }
 0x13f   : > { %1262 = vst [vmem:[#allocation2 + $0x10] sm:$0xff] %v1230_v3  ;;  %1266 = vst [vmem:[#allocation2 + $0x30] sm:$0xff] %v1234_v4 }
 0x140   : > { %1263 = vst [vmem:[#allocation2 + $0x18] sm:$0xff] %v1231_v7  ;;  %1267 = vst [vmem:[#allocation2 + $0x38] sm:$0xff] %v1235_v8 }
 0x142   : > { %v764_v9 = vpop.f32.mrb[8].mxu0  ;;  %v853_v10 = vpop.f32.mrb[8].mxu1 }
 0x143   : > { %v766_v11 = vpop.f32.mrb[9].mxu0  ;;  %v855_v12 = vpop.f32.mrb[9].mxu1 }
 0x144   : > { %v768_v13 = vpop.f32.mrb[10].mxu0  ;;  %v857_v14 = vpop.f32.mrb[10].mxu1 }
 0x145   : > { %v1236_v15 = vpack.c.bf16 %v768_v13, %v764_v9  ;;  %v1240_v16 = vpack.c.bf16 %v857_v14, %v853_v10  ;;  %v770_v17 = vpop.f32.mrb[11].mxu0  ;;  %v859_v18 = vpop.f32.mrb[11].mxu1 }
 0x146   : > { %v1237_v19 = vpack.c.bf16 %v770_v17, %v766_v11  ;;  %v1241_v20 = vpack.c.bf16 %v859_v18, %v855_v12 }
 0x147   : > { %1268 = vst [vmem:[#allocation2 + $0x40] sm:$0xff] %v1236_v15  ;;  %1272 = vst [vmem:[#allocation2 + $0x60] sm:$0xff] %v1240_v16 }
 0x148   : > { %1269 = vst [vmem:[#allocation2 + $0x48] sm:$0xff] %v1237_v19  ;;  %1273 = vst [vmem:[#allocation2 + $0x68] sm:$0xff] %v1241_v20 }
 0x14a   : > { %v774_v21 = vpop.f32.mrb[12].mxu0  ;;  %v863_v22 = vpop.f32.mrb[12].mxu1 }
 0x14b   : > { %v776_v23 = vpop.f32.mrb[13].mxu0  ;;  %v865_v24 = vpop.f32.mrb[13].mxu1 }
 0x14c   : > { %v778_v25 = vpop.f32.mrb[14].mxu0  ;;  %v867_v26 = vpop.f32.mrb[14].mxu1 }
 0x14d   : > { %v1238_v27 = vpack.c.bf16 %v778_v25, %v774_v21  ;;  %v1242_v28 = vpack.c.bf16 %v867_v26, %v863_v22  ;;  %v780_v29 = vpop.f32.mrb[15].mxu0  ;;  %v869_v30 = vpop.f32.mrb[15].mxu1 }
 0x14e   : > { %v1239_v31 = vpack.c.bf16 %v780_v29, %v776_v23  ;;  %v1243_v32 = vpack.c.bf16 %v869_v30, %v865_v24 }
 0x14f   : > { %1270 = vst [vmem:[#allocation2 + $0x50] sm:$0xff] %v1238_v27  ;;  %1274 = vst [vmem:[#allocation2 + $0x70] sm:$0xff] %v1242_v28 }
 0x150   : > { %1271 = vst [vmem:[#allocation2 + $0x58] sm:$0xff] %v1239_v31  ;;  %1275 = vst [vmem:[#allocation2 + $0x78] sm:$0xff] %v1243_v32 }
 0x152   : > { %v942_v33 = vpop.f32.mrb[16].mxu0  ;;  %v1031_v34 = vpop.f32.mrb[16].mxu1 }
 0x153   : > { %v944_v35 = vpop.f32.mrb[17].mxu0  ;;  %v1033_v36 = vpop.f32.mrb[17].mxu1 }
 0x154   : > { %v946_v37 = vpop.f32.mrb[18].mxu0  ;;  %v1035_v38 = vpop.f32.mrb[18].mxu1 }
 0x155   : > { %v1244_v39 = vpack.c.bf16 %v946_v37, %v942_v33  ;;  %v1248_v40 = vpack.c.bf16 %v1035_v38, %v1031_v34  ;;  %v948_v41 = vpop.f32.mrb[19].mxu0  ;;  %v1037_v42 = vpop.f32.mrb[19].mxu1 }
 0x156   : > { %v1245_v43 = vpack.c.bf16 %v948_v41, %v944_v35  ;;  %v1249_v44 = vpack.c.bf16 %v1037_v42, %v1033_v36 }
 0x157   : > { %1276 = vst [vmem:[#allocation2 + $0x80] sm:$0xff] %v1244_v39  ;;  %1280 = vst [vmem:[#allocation2 + $0xa0] sm:$0xff] %v1248_v40 }
 0x158   : > { %1277 = vst [vmem:[#allocation2 + $0x88] sm:$0xff] %v1245_v43  ;;  %1281 = vst [vmem:[#allocation2 + $0xa8] sm:$0xff] %v1249_v44 }
 0x15a   : > { %v952_v45 = vpop.f32.mrb[20].mxu0  ;;  %v1041_v46 = vpop.f32.mrb[20].mxu1 }
 0x15b   : > { %v954_v47 = vpop.f32.mrb[21].mxu0  ;;  %v1043_v48 = vpop.f32.mrb[21].mxu1 }
 0x15c   : > { %v956_v49 = vpop.f32.mrb[22].mxu0  ;;  %v1045_v50 = vpop.f32.mrb[22].mxu1 }
 0x15d   : > { %v1246_v51 = vpack.c.bf16 %v956_v49, %v952_v45  ;;  %v1250_v52 = vpack.c.bf16 %v1045_v50, %v1041_v46  ;;  %v958_v53 = vpop.f32.mrb[23].mxu0  ;;  %v1047_v54 = vpop.f32.mrb[23].mxu1 }
 0x15e   : > { %v1247_v55 = vpack.c.bf16 %v958_v53, %v954_v47  ;;  %v1251_v56 = vpack.c.bf16 %v1047_v54, %v1043_v48 }
 0x15f   : > { %1278 = vst [vmem:[#allocation2 + $0x90] sm:$0xff] %v1246_v51  ;;  %1282 = vst [vmem:[#allocation2 + $0xb0] sm:$0xff] %v1250_v52 }
 0x160   : > { %1279 = vst [vmem:[#allocation2 + $0x98] sm:$0xff] %v1247_v55  ;;  %1283 = vst [vmem:[#allocation2 + $0xb8] sm:$0xff] %v1251_v56 }
 0x162   : > { %v1120_v57 = vpop.f32.mrb[24].mxu0  ;;  %v1209_v58 = vpop.f32.mrb[24].mxu1 }
 0x163   : > { %v1122_v59 = vpop.f32.mrb[25].mxu0  ;;  %v1211_v60 = vpop.f32.mrb[25].mxu1 }
 0x164   : > { %v1124_v61 = vpop.f32.mrb[26].mxu0  ;;  %v1213_v62 = vpop.f32.mrb[26].mxu1 }
 0x165   : > { %v1252_v63 = vpack.c.bf16 %v1124_v61, %v1120_v57  ;;  %v1256_v0 = vpack.c.bf16 %v1213_v62, %v1209_v58  ;;  %v1126_v1 = vpop.f32.mrb[27].mxu0  ;;  %v1215_v2 = vpop.f32.mrb[27].mxu1 }
 0x166   : > { %v1253_v3 = vpack.c.bf16 %v1126_v1, %v1122_v59  ;;  %v1257_v4 = vpack.c.bf16 %v1215_v2, %v1211_v60 }
 0x167   : > { %1284 = vst [vmem:[#allocation2 + $0xc0] sm:$0xff] %v1252_v63  ;;  %1288 = vst [vmem:[#allocation2 + $0xe0] sm:$0xff] %v1256_v0 }
 0x168   : > { %1285 = vst [vmem:[#allocation2 + $0xc8] sm:$0xff] %v1253_v3  ;;  %1289 = vst [vmem:[#allocation2 + $0xe8] sm:$0xff] %v1257_v4 }
 0x16a   : > { %v1130_v5 = vpop.f32.mrb[28].mxu0  ;;  %v1219_v6 = vpop.f32.mrb[28].mxu1 }
 0x16b   : > { %v1132_v7 = vpop.f32.mrb[29].mxu0  ;;  %v1221_v8 = vpop.f32.mrb[29].mxu1 }
 0x16c   : > { %v1134_v9 = vpop.f32.mrb[30].mxu0  ;;  %v1223_v10 = vpop.f32.mrb[30].mxu1 }
 0x16d   : > { %v1254_v11 = vpack.c.bf16 %v1134_v9, %v1130_v5  ;;  %v1258_v12 = vpack.c.bf16 %v1223_v10, %v1219_v6  ;;  %v1136_v13 = vpop.f32.mrb[31].mxu0  ;;  %v1225_v14 = vpop.f32.mrb[31].mxu1 }
 0x16e   : > { %v1255_v15 = vpack.c.bf16 %v1136_v13, %v1132_v7  ;;  %v1259_v16 = vpack.c.bf16 %v1225_v14, %v1221_v8 }
 0x16f   : > { %1286 = vst [vmem:[#allocation2 + $0xd0] sm:$0xff] %v1254_v11  ;;  %1290 = vst [vmem:[#allocation2 + $0xf0] sm:$0xff] %v1258_v12 }
 0x170   : > { %1287 = vst [vmem:[#allocation2 + $0xd8] sm:$0xff] %v1255_v15  ;;  %1291 = vst [vmem:[#allocation2 + $0xf8] sm:$0xff] %v1259_v16 }
 0x171 PF: > { %v2283_v17 = vld [vmem:[%s2592_s22 + $0x4] ss:$8 sps:$4 sm:$0x1f]   ;;  %vm1363_vm1 = vcmask 1044480   ;;  %v2420_v20 = vmov 0   ;;  %vm1338_vm2 = vcmask 80896   ;;  %v1320_v13 = vlaneseq }
 0x172   : > { %v2285_v18 = vld [vmem:[%s2592_s22] ss:$8 sps:$4 sm:$0x1f]   ;;  %2113 = vmatprep.subr.msk.bf16.mxu0 %vm1363_vm1, %v2283_v17  ;;  %1402 = vmatprep.mubr.bf16.mxu0 %v2420_v20  ;;  %v1566_v26 = vld [vmem:[#allocation2 + $0x18] sm:$0xff]  ;;  %v1294_v27 = vld [vmem:[%s2587_s24 + $0x10] sm:$0xff]  ;;  %s1871_s27 = sshll.u32 %s412_s2, 4  ;;  %s2807_s27 = int_to_ptr.vmem [resolvable:$true] %s1871_s27 }
 0x173   : > { %v1292_v19 = vld [vmem:[%s2587_s24] sm:$0xff]  ;;  %v1293_v21 = vld [vmem:[%s2587_s24 + $0x8] sm:$0xff]  ;;  %v1365_v22 = vsel %vm1363_vm1, %v2285_v18, 0  ;;  %2282 = vset.pattern.permute.xlu0 %v2420_v20  ;;  %v1295_v28 = vld [vmem:[%s2587_s24 + $0x18] sm:$0xff]  ;;  %v2704_v14 = vshrl.u32 %v1320_v13, 7  ;;  %s2316_s23 = scalar_lea.vmem %s2807_s27, 128 }
 0x174   : > { %v1308_v23 = vpack.c.bf16 %v1293_v21, %v1292_v19  ;;  %1371 = vmatpush1.bf16.msra.mxu0 %v1365_v22  ;;  %v1564_v24 = vld [vmem:[#allocation2 + $0x8] sm:$0xff]  ;;  %v1563_v25 = vld [vmem:[#allocation2] sm:$0xff]  ;;  %v1565_v29 = vld [vmem:[#allocation2 + $0x10] sm:$0xff]  ;;  %v1309_v30 = vpack.c.bf16 %v1295_v28, %v1294_v27  ;;  %p2317_p12 = scmp.ne.s32.totalorder %s2807_s27, %s2316_s23  ;;  %p2907_p0 = scmp.ne.s32.totalorder %s2892_s19, 0 }
 0x175   : > { %1607 = vmatprep.subr.bf16.mxu1 %v1564_v24  ;;  %v1568_v31 = vld [vmem:[#allocation2 + $0x28] sm:$0xff]  ;;  %v1567_v32 = vld [vmem:[#allocation2 + $0x20] sm:$0xff]  ;;  %v1570_v33 = vld [vmem:[#allocation2 + $0x38] sm:$0xff]  ;;  %v1322_v15 = vsub.s32 0, %v2704_v14  ;;  %v1326_v17 = vsub.s32 1, %v2704_v14 }
 0x176   : > { %1608 = vmatpush1.bf16.msra.mxu1 %v1563_v25  ;;  %v1296_v34 = vld [vmem:[%s2587_s24 + $0x20] sm:$0xff]  ;;  %v1297_v35 = vld [vmem:[%s2587_s24 + $0x28] sm:$0xff]  ;;  %v1569_v36 = vld [vmem:[#allocation2 + $0x30] sm:$0xff]  ;;  %p2318_p2 = pnand %p2317_p12, %p2907_p0 }
 0x177   : > { %2114 = vmatmul.mubr.msk.bf16.vlgmr.msra.gmra.mrb[0].mxu0 %vm1338_vm2, %v1308_v23  ;;  %1609 = vmatprep.subr.bf16.mxu1 %v1566_v26  ;;  %v1310_v37 = vpack.c.bf16 %v1297_v35, %v1296_v34  ;;  %v1572_v38 = vld [vmem:[#allocation2 + $0x48] sm:$0xff]  ;;  %v1571_v39 = vld [vmem:[#allocation2 + $0x40] sm:$0xff]  ;;  %v1574_v40 = vld [vmem:[#allocation2 + $0x58] sm:$0xff] }
 0x178   : > { %1412 = vmatprep.mubr.bf16.mxu0 %v2420_v20  ;;  %v1298_v41 = vld [vmem:[%s2587_s24 + $0x30] sm:$0xff]  ;;  %v1299_v42 = vld [vmem:[%s2587_s24 + $0x38] sm:$0xff]  ;;  %v1576_v45 = vld [vmem:[#allocation2 + $0x68] sm:$0xff]  ;;  %p2319_p5 = pneg %p2318_p2 }
 0x179   : > { %v1573_v43 = vld [vmem:[#allocation2 + $0x50] sm:$0xff]  ;;  %v1311_v44 = vpack.c.bf16 %v1299_v42, %v1298_v41  ;;  %v1575_v46 = vld [vmem:[#allocation2 + $0x60] sm:$0xff]  ;;  %v1578_v47 = vld [vmem:[#allocation2 + $0x78] sm:$0xff] }
 0x17a   : > { %1610 = vmatpush1.bf16.msra.mxu1 %v1565_v29  ;;  %v1300_v48 = vld [vmem:[%s2587_s24 + $0x40] sm:$0xff]  ;;  %v1301_v49 = vld [vmem:[%s2587_s24 + $0x48] sm:$0xff]  ;;  %v1577_v50 = vld [vmem:[#allocation2 + $0x70] sm:$0xff] }
 0x17b   : > { %1611 = vmatprep.subr.bf16.mxu1 %v1568_v31  ;;  %v1312_v51 = vpack.c.bf16 %v1301_v49, %v1300_v48  ;;  %v1580_v52 = vld [vmem:[#allocation2 + $0x88] sm:$0xff]  ;;  %v1579_v53 = vld [vmem:[#allocation2 + $0x80] sm:$0xff]  ;;  %v1582_v54 = vld [vmem:[#allocation2 + $0x98] sm:$0xff] }
 0x17c   : > { %v1302_v55 = vld [vmem:[%s2587_s24 + $0x50] sm:$0xff]  ;;  %v1303_v56 = vld [vmem:[%s2587_s24 + $0x58] sm:$0xff]  ;;  %v1584_v59 = vld [vmem:[#allocation2 + $0xa8] sm:$0xff] }
 0x17d   : > { %v1581_v57 = vld [vmem:[#allocation2 + $0x90] sm:$0xff]  ;;  %v1313_v58 = vpack.c.bf16 %v1303_v56, %v1302_v55  ;;  %v1583_v60 = vld [vmem:[#allocation2 + $0xa0] sm:$0xff]  ;;  %v1586_v61 = vld [vmem:[#allocation2 + $0xb8] sm:$0xff] }
 0x17e   : > { %1612 = vmatpush1.bf16.msra.mxu1 %v1567_v32  ;;  %v1304_v62 = vld [vmem:[%s2587_s24 + $0x60] sm:$0xff]  ;;  %v1305_v63 = vld [vmem:[%s2587_s24 + $0x68] sm:$0xff]  ;;  %v1585_v0 = vld [vmem:[#allocation2 + $0xb0] sm:$0xff] }
 0x17f   : > { %2115 = vmatmul.mubr.msk.bf16.gmra.mrb[4].mxu0 %vm1338_vm2, %v1309_v30  ;;  %1613 = vmatprep.subr.bf16.mxu1 %v1570_v33  ;;  %v1314_v1 = vpack.c.bf16 %v1305_v63, %v1304_v62  ;;  %v1588_v2 = vld [vmem:[#allocation2 + $0xc8] sm:$0xff]  ;;  %v1587_v3 = vld [vmem:[#allocation2 + $0xc0] sm:$0xff]  ;;  %v1306_v4 = vld [vmem:[%s2587_s24 + $0x70] sm:$0xff] }
 0x180   : > { %1422 = vmatprep.mubr.bf16.mxu0 %v2420_v20  ;;  %v1307_v5 = vld [vmem:[%s2587_s24 + $0x78] sm:$0xff]  ;;  %v1589_v8 = vld [vmem:[#allocation2 + $0xd0] sm:$0xff]  ;;  %v1592_v9 = vld [vmem:[#allocation2 + $0xe8] sm:$0xff]  ;;  %s2421_s24 = smov [#allocation6]  }
 0x181   : > { %v1315_v6 = vpack.c.bf16 %v1307_v5, %v1306_v4  ;;  %v1590_v7 = vld [vmem:[#allocation2 + $0xd8] sm:$0xff]  ;;  %v1591_v10 = vld [vmem:[#allocation2 + $0xe0] sm:$0xff]  ;;  %v1593_v12 = vld [vmem:[#allocation2 + $0xf0] sm:$0xff]  ;;  %s2320_s22 = sshll.u32 %s2421_s24, 4  ;;  %s2321_s22 = int_to_ptr.vmem [resolvable:$false] %s2320_s22 }
 0x182   : > { %1614 = vmatpush1.bf16.msra.mxu1 %v1569_v36  ;;  %v1594_v11 = vld [vmem:[#allocation2 + $0xf8] sm:$0xff]  ;;  %v1318_v16 = vld [vmem:[%s2597_s25] sm:$0x3]  ;;  %s2322_s18 = scalar_lea.vmem %s2321_s22, 256  ;;  %p2323_p6 = scmp.lt.s32.totalorder %s2807_s27, %s2321_s22 }
 0x183   : > { %1615 = vmatprep.subr.bf16.mxu1 %v1572_v38  ;;  %v2711_v18 = vrot.slane %v1318_v16, %v1322_v15  ;;  %v2715_v19 = vrot.slane %v1318_v16, %v1326_v17  ;;  %p2324_p7 = scmp.lt.s32.totalorder %s2322_s18, %s2316_s23 }
 0x185   : > { %p2325_p9 = por %p2324_p7, %p2323_p6 }
 0x186   : > { %1616 = vmatpush1.bf16.msra.mxu1 %v1571_v39 }
 0x187   : > { %2116 = vmatmul.mubr.msk.bf16.gmra.mrb[8].mxu0 %vm1338_vm2, %v1310_v37  ;;  %1617 = vmatprep.subr.bf16.mxu1 %v1574_v40  ;;  %p2326_p11 = pnand %p2325_p9, %p2319_p5 }
 0x188   : > { %1432 = vmatprep.mubr.bf16.mxu0 %v2420_v20 }
 0x18a   : > { %1618 = vmatpush1.bf16.msra.mxu1 %v1573_v43 }
 0x18b   : > { %1619 = vmatprep.subr.bf16.mxu1 %v1576_v45 }
 0x18e   : > { %1620 = vmatpush1.bf16.msra.mxu1 %v1575_v46 }
 0x18f   : > { %2117 = vmatmul.mubr.msk.bf16.gmra.mrb[12].mxu0 %vm1338_vm2, %v1311_v44  ;;  %1621 = vmatprep.subr.bf16.mxu1 %v1578_v47 }
 0x190   : > { %1442 = vmatprep.mubr.bf16.mxu0 %v2420_v20 }
 0x192   : > { %1622 = vmatpush1.bf16.msra.mxu1 %v1577_v50 }
 0x193   : > { %1623 = vmatprep.subr.bf16.mxu1 %v1580_v52 }
 0x196   : > { %1624 = vmatpush1.bf16.msra.mxu1 %v1579_v53 }
 0x197   : > { %2118 = vmatmul.mubr.msk.bf16.gmra.mrb[16].mxu0 %vm1338_vm2, %v1312_v51  ;;  %1625 = vmatprep.subr.bf16.mxu1 %v1582_v54 }
 0x198   : > { %1452 = vmatprep.mubr.bf16.mxu0 %v2420_v20 }
 0x19a   : > { %1626 = vmatpush1.bf16.msra.mxu1 %v1581_v57 }
 0x19b   : > { %1627 = vmatprep.subr.bf16.mxu1 %v1584_v59 }
 0x19e   : > { %1628 = vmatpush1.bf16.msra.mxu1 %v1583_v60 }
 0x19f   : > { %2119 = vmatmul.mubr.msk.bf16.gmra.mrb[20].mxu0 %vm1338_vm2, %v1313_v58  ;;  %1629 = vmatprep.subr.bf16.mxu1 %v1586_v61 }
 0x1a0   : > { %1462 = vmatprep.mubr.bf16.mxu0 %v2420_v20 }
 0x1a2   : > { %1630 = vmatpush1.bf16.msra.mxu1 %v1585_v0 }
 0x1a3   : > { %1631 = vmatprep.subr.bf16.mxu1 %v1588_v2 }
 0x1a6   : > { %1632 = vmatpush1.bf16.msra.mxu1 %v1587_v3 }
 0x1a7   : > { %2120 = vmatmul.mubr.msk.bf16.gmra.mrb[24].mxu0 %vm1338_vm2, %v1314_v1  ;;  %1633 = vmatprep.subr.bf16.mxu1 %v1590_v7 }
 0x1a8   : > { %1472 = vmatprep.mubr.bf16.mxu0 %v2420_v20 }
 0x1aa   : > { %1634 = vmatpush1.bf16.msra.mxu1 %v1589_v8 }
 0x1ab   : > { %1635 = vmatprep.subr.bf16.mxu1 %v1592_v9 }
 0x1ae   : > { %1636 = vmatpush1.bf16.msra.mxu1 %v1591_v10 }
 0x1af   : > { %2121 = vmatmul.mubr.msk.bf16.gmra.mrb[28].mxu0 %vm1338_vm2, %v1315_v6  ;;  %1637 = vmatprep.subr.bf16.mxu1 %v1594_v11 }
 0x1b2   : > { %1638 = vmatpush1.bf16.msra.mxu1 %v1593_v12 }
 0x24a   : > { %v1404_v20 = vpop.f32.mrb[0].mxu0 }
 0x24b   : > { %v1405_v21 = vadd.f32 %v1404_v20, %v2711_v18  ;;  %v1406_v22 = vpop.f32.mrb[1].mxu0 }
 0x24c   : > { %v1407_v23 = vadd.f32 %v1406_v22, %v2715_v19  ;;  %v1408_v24 = vpop.f32.mrb[2].mxu0 }
 0x24d   : > { %v1483_v25 = vmul.f32 0.05, %v1405_v21  ;;  %v1409_v26 = vadd.f32 %v1408_v24, %v2711_v18  ;;  %v1410_v27 = vpop.f32.mrb[3].mxu0 }
 0x24e   : > { %v1484_v28 = vmul.f32 0.05, %v1407_v23  ;;  %v1411_v29 = vadd.f32 %v1410_v27, %v2715_v19 }
 0x24f   : > { %v1485_v30 = vmul.f32 0.05, %v1409_v26  ;;  %v1515_v32 = vmax.f32 %v1405_v21, %v1483_v25 }
 0x250   : > { %v1486_v31 = vmul.f32 0.05, %v1411_v29  ;;  %v1516_v35 = vmax.f32 %v1407_v23, %v1484_v28 }
 0x251   : > { %v1517_v33 = vmax.f32 %v1409_v26, %v1485_v30 }
 0x252   : > { %v1414_v34 = vpop.f32.mrb[4].mxu0  ;;  %v1518_v36 = vmax.f32 %v1411_v29, %v1486_v31 }
 0x253   : > { %v1415_v37 = vadd.f32 %v1414_v34, %v2711_v18  ;;  %v1416_v38 = vpop.f32.mrb[5].mxu0  ;;  %v1547_v39 = vpack.c.bf16 %v1517_v33, %v1515_v32 }
 0x254   : > { %v1417_v40 = vadd.f32 %v1416_v38, %v2715_v19  ;;  %v1418_v41 = vpop.f32.mrb[6].mxu0  ;;  %v1548_v42 = vpack.c.bf16 %v1518_v36, %v1516_v35 }
 0x255   : > { %v1487_v43 = vmul.f32 0.05, %v1415_v37  ;;  %v1419_v44 = vadd.f32 %v1418_v41, %v2711_v18  ;;  %v1420_v45 = vpop.f32.mrb[7].mxu0 }
 0x256   : > { %v1488_v46 = vmul.f32 0.05, %v1417_v40  ;;  %v1421_v47 = vadd.f32 %v1420_v45, %v2715_v19  ;;  %1639 = vmatprep.mubr.bf16.mxu1 %v1548_v42 }
 0x257   : > { %v1489_v48 = vmul.f32 0.05, %v1419_v44  ;;  %1640 = vmatmul.mubr.bf16.vlgmr.msra.gmra.mrb[0].mxu1 %v1547_v39  ;;  %v1519_v50 = vmax.f32 %v1415_v37, %v1487_v43 }
 0x258   : > { %v1490_v49 = vmul.f32 0.05, %v1421_v47  ;;  %v1520_v52 = vmax.f32 %v1417_v40, %v1488_v46 }
 0x259   : > { %v1521_v51 = vmax.f32 %v1419_v44, %v1489_v48 }
 0x25a   : > { %v1522_v53 = vmax.f32 %v1421_v47, %v1490_v49  ;;  %v1424_v54 = vpop.f32.mrb[8].mxu0 }
 0x25b   : > { %v1425_v55 = vadd.f32 %v1424_v54, %v2711_v18  ;;  %v1426_v56 = vpop.f32.mrb[9].mxu0  ;;  %v1549_v57 = vpack.c.bf16 %v1521_v51, %v1519_v50 }
 0x25c   : > { %v1427_v58 = vadd.f32 %v1426_v56, %v2715_v19  ;;  %v1428_v59 = vpop.f32.mrb[10].mxu0  ;;  %v1550_v60 = vpack.c.bf16 %v1522_v53, %v1520_v52 }
 0x25d   : > { %v1491_v61 = vmul.f32 0.05, %v1425_v55  ;;  %v1429_v62 = vadd.f32 %v1428_v59, %v2711_v18  ;;  %v1430_v63 = vpop.f32.mrb[11].mxu0 }
 0x25e   : > { %v1492_v0 = vmul.f32 0.05, %v1427_v58  ;;  %v1431_v1 = vadd.f32 %v1430_v63, %v2715_v19  ;;  %1649 = vmatprep.mubr.bf16.mxu1 %v1550_v60 }
 0x25f   : > { %v1493_v2 = vmul.f32 0.05, %v1429_v62  ;;  %1650 = vmatmul.mubr.bf16.gmra.mrb[4].mxu1 %v1549_v57  ;;  %v1523_v4 = vmax.f32 %v1425_v55, %v1491_v61 }
 0x260   : > { %v1494_v3 = vmul.f32 0.05, %v1431_v1  ;;  %v1524_v6 = vmax.f32 %v1427_v58, %v1492_v0 }
 0x261   : > { %v1525_v5 = vmax.f32 %v1429_v62, %v1493_v2 }
 0x262   : > { %v1526_v7 = vmax.f32 %v1431_v1, %v1494_v3  ;;  %v1434_v8 = vpop.f32.mrb[12].mxu0 }
 0x263   : > { %v1435_v9 = vadd.f32 %v1434_v8, %v2711_v18  ;;  %v1436_v10 = vpop.f32.mrb[13].mxu0  ;;  %v1551_v11 = vpack.c.bf16 %v1525_v5, %v1523_v4 }
 0x264   : > { %v1437_v12 = vadd.f32 %v1436_v10, %v2715_v19  ;;  %v1438_v13 = vpop.f32.mrb[14].mxu0  ;;  %v1552_v16 = vpack.c.bf16 %v1526_v7, %v1524_v6 }
 0x265   : > { %v1495_v20 = vmul.f32 0.05, %v1435_v9  ;;  %v1439_v21 = vadd.f32 %v1438_v13, %v2711_v18  ;;  %v1440_v22 = vpop.f32.mrb[15].mxu0 }
 0x266   : > { %v1496_v23 = vmul.f32 0.05, %v1437_v12  ;;  %v1441_v24 = vadd.f32 %v1440_v22, %v2715_v19  ;;  %1659 = vmatprep.mubr.bf16.mxu1 %v1552_v16 }
 0x267   : > { %v1497_v25 = vmul.f32 0.05, %v1439_v21  ;;  %1660 = vmatmul.mubr.bf16.gmra.mrb[8].mxu1 %v1551_v11  ;;  %v1527_v27 = vmax.f32 %v1435_v9, %v1495_v20 }
 0x268   : > { %v1498_v26 = vmul.f32 0.05, %v1441_v24  ;;  %v1528_v29 = vmax.f32 %v1437_v12, %v1496_v23 }
 0x269   : > { %v1529_v28 = vmax.f32 %v1439_v21, %v1497_v25 }
 0x26a   : > { %v1530_v30 = vmax.f32 %v1441_v24, %v1498_v26  ;;  %v1444_v31 = vpop.f32.mrb[16].mxu0 }
 0x26b   : > { %v1445_v32 = vadd.f32 %v1444_v31, %v2711_v18  ;;  %v1446_v33 = vpop.f32.mrb[17].mxu0  ;;  %v1553_v34 = vpack.c.bf16 %v1529_v28, %v1527_v27 }
 0x26c   : > { %v1447_v35 = vadd.f32 %v1446_v33, %v2715_v19  ;;  %v1448_v36 = vpop.f32.mrb[18].mxu0  ;;  %v1554_v37 = vpack.c.bf16 %v1530_v30, %v1528_v29 }
 0x26d   : > { %v1499_v38 = vmul.f32 0.05, %v1445_v32  ;;  %v1449_v39 = vadd.f32 %v1448_v36, %v2711_v18  ;;  %v1450_v40 = vpop.f32.mrb[19].mxu0 }
 0x26e   : > { %v1500_v41 = vmul.f32 0.05, %v1447_v35  ;;  %v1451_v42 = vadd.f32 %v1450_v40, %v2715_v19  ;;  %1669 = vmatprep.mubr.bf16.mxu1 %v1554_v37 }
 0x26f   : > { %v1501_v43 = vmul.f32 0.05, %v1449_v39  ;;  %1670 = vmatmul.mubr.bf16.gmra.mrb[12].mxu1 %v1553_v34  ;;  %v1531_v45 = vmax.f32 %v1445_v32, %v1499_v38 }
 0x270   : > { %v1502_v44 = vmul.f32 0.05, %v1451_v42  ;;  %v1532_v47 = vmax.f32 %v1447_v35, %v1500_v41 }
 0x271   : > { %v1533_v46 = vmax.f32 %v1449_v39, %v1501_v43 }
 0x272   : > { %v1534_v48 = vmax.f32 %v1451_v42, %v1502_v44  ;;  %v1454_v49 = vpop.f32.mrb[20].mxu0 }
 0x273   : > { %v1455_v50 = vadd.f32 %v1454_v49, %v2711_v18  ;;  %v1456_v51 = vpop.f32.mrb[21].mxu0  ;;  %v1555_v52 = vpack.c.bf16 %v1533_v46, %v1531_v45 }
 0x274   : > { %v1457_v53 = vadd.f32 %v1456_v51, %v2715_v19  ;;  %v1458_v54 = vpop.f32.mrb[22].mxu0  ;;  %v1556_v55 = vpack.c.bf16 %v1534_v48, %v1532_v47  ;;  %v1595_v47 = vld [vmem:[%s2607_s26] sm:$0x3] }
 0x275   : > { %v1503_v56 = vmul.f32 0.05, %v1455_v50  ;;  %v1459_v57 = vadd.f32 %v1458_v54, %v2711_v18  ;;  %v1460_v58 = vpop.f32.mrb[23].mxu0  ;;  %v2758_v48 = vrot.slane %v1595_v47, %v1322_v15  ;;  %v2762_v49 = vrot.slane %v1595_v47, %v1326_v17 }
 0x276   : > { %v1504_v59 = vmul.f32 0.05, %v1457_v53  ;;  %v1461_v60 = vadd.f32 %v1460_v58, %v2715_v19  ;;  %1679 = vmatprep.mubr.bf16.mxu1 %v1556_v55 }
 0x277   : > { %v1505_v61 = vmul.f32 0.05, %v1459_v57  ;;  %1680 = vmatmul.mubr.bf16.gmra.mrb[16].mxu1 %v1555_v52  ;;  %v1535_v63 = vmax.f32 %v1455_v50, %v1503_v56 }
 0x278   : > { %v1506_v62 = vmul.f32 0.05, %v1461_v60  ;;  %v1536_v1 = vmax.f32 %v1457_v53, %v1504_v59 }
 0x279   : > { %v1537_v0 = vmax.f32 %v1459_v57, %v1505_v61 }
 0x27a   : > { %v1538_v2 = vmax.f32 %v1461_v60, %v1506_v62  ;;  %v1464_v3 = vpop.f32.mrb[24].mxu0 }
 0x27b   : > { %v1465_v4 = vadd.f32 %v1464_v3, %v2711_v18  ;;  %v1466_v5 = vpop.f32.mrb[25].mxu0  ;;  %v1557_v6 = vpack.c.bf16 %v1537_v0, %v1535_v63 }
 0x27c   : > { %v1467_v7 = vadd.f32 %v1466_v5, %v2715_v19  ;;  %v1468_v8 = vpop.f32.mrb[26].mxu0  ;;  %v1558_v9 = vpack.c.bf16 %v1538_v2, %v1536_v1 }
 0x27d   : > { %v1507_v10 = vmul.f32 0.05, %v1465_v4  ;;  %v1469_v11 = vadd.f32 %v1468_v8, %v2711_v18  ;;  %v1470_v12 = vpop.f32.mrb[27].mxu0 }
 0x27e   : > { %v1508_v13 = vmul.f32 0.05, %v1467_v7  ;;  %v1471_v16 = vadd.f32 %v1470_v12, %v2715_v19  ;;  %1689 = vmatprep.mubr.bf16.mxu1 %v1558_v9 }
 0x27f   : > { %v1509_v20 = vmul.f32 0.05, %v1469_v11  ;;  %1690 = vmatmul.mubr.bf16.gmra.mrb[20].mxu1 %v1557_v6  ;;  %v1539_v22 = vmax.f32 %v1465_v4, %v1507_v10 }
 0x280   : > { %v1510_v21 = vmul.f32 0.05, %v1471_v16  ;;  %v1540_v24 = vmax.f32 %v1467_v7, %v1508_v13 }
 0x281   : > { %v1541_v23 = vmax.f32 %v1469_v11, %v1509_v20 }
 0x282   : > { %v1542_v25 = vmax.f32 %v1471_v16, %v1510_v21  ;;  %v1474_v26 = vpop.f32.mrb[28].mxu0 }
 0x283   : > { %v1475_v27 = vadd.f32 %v1474_v26, %v2711_v18  ;;  %v1476_v28 = vpop.f32.mrb[29].mxu0  ;;  %v1559_v29 = vpack.c.bf16 %v1541_v23, %v1539_v22 }
 0x284   : > { %v1477_v30 = vadd.f32 %v1476_v28, %v2715_v19  ;;  %v1478_v31 = vpop.f32.mrb[30].mxu0  ;;  %v1560_v32 = vpack.c.bf16 %v1542_v25, %v1540_v24 }
 0x285   : > { %v1511_v33 = vmul.f32 0.05, %v1475_v27  ;;  %v1479_v34 = vadd.f32 %v1478_v31, %v2711_v18  ;;  %v1480_v35 = vpop.f32.mrb[31].mxu0  ;;  %v2750_v18 = vld [vmem:[%s2612_s0] sm:$0xff]  ;;  %s2125_s0 = sshll.u32 %s2402_s9, 1 }
 0x286   : > { %v1512_v36 = vmul.f32 0.05, %v1477_v30  ;;  %v1481_v37 = vadd.f32 %v1480_v35, %v2715_v19  ;;  %1699 = vmatprep.mubr.bf16.mxu1 %v1560_v32  ;;  %v2123_v46 = vcombine.high %v2750_v18, %v2750_v18  ;;  %v1801_v19 = vld [vmem:[%s2617_s1] sm:$0xff]  ;;  %s1867_s1 = sadd.s32 %s2398_s30, %s2125_s0  ;;  %s2906_s30 = sand.u32 1, %s2390_s28  }
 0x287   : > { %v1513_v38 = vmul.f32 0.05, %v1479_v34  ;;  %1700 = vmatmul.mubr.bf16.gmra.mrb[24].mxu1 %v1559_v29  ;;  %v1543_v40 = vmax.f32 %v1475_v27, %v1511_v33  ;;  %1804 = vperm.xlu0 %2282, %v1801_v19   ;;  %s2126_s7 = sshll.u32 %s1867_s1, 7  ;;  %s1856_s9 = scalar_lea.sflag [#allocation5], %s2906_s30 }
 0x288   : > { %v1514_v39 = vmul.f32 0.05, %v1481_v37  ;;  %v1544_v42 = vmax.f32 %v1477_v30, %v1512_v36  ;;  %1846 = vmatprep.mubr.bf16.mxu0 %v2123_v46  ;;  %s2805_s25 = scalar_lea.hbm %s2870_s8, %s2126_s7 }
 0x289   : > { %v1545_v41 = vmax.f32 %v1479_v34, %v1513_v38 }
 0x28a   : > { %v1546_v43 = vmax.f32 %v1481_v37, %v1514_v39 }
 0x28b   : > { %v1561_v44 = vpack.c.bf16 %v1545_v41, %v1543_v40 }
 0x28c   : > { %v1562_v45 = vpack.c.bf16 %v1546_v43, %v1544_v42 }
 0x28e   : > { %1709 = vmatprep.mubr.bf16.mxu1 %v1562_v45 }
 0x28f   : > { %1710 = vmatmul.mubr.bf16.gmra.mrb[28].mxu1 %v1561_v44 }
 0x32a   : > { %v1641_v50 = vpop.f32.mrb[0].mxu1 }
 0x32b   : > { %v1642_v51 = vadd.f32 %v1641_v50, %v2758_v48  ;;  %v1643_v52 = vpop.f32.mrb[1].mxu1 }
 0x32c   : > { %v1644_v53 = vadd.f32 %v1643_v52, %v2762_v49  ;;  %v1645_v54 = vpop.f32.mrb[2].mxu1 }
 0x32d   : > { %v1720_v55 = vmul.f32 0.05, %v1642_v51  ;;  %v1646_v56 = vadd.f32 %v1645_v54, %v2758_v48  ;;  %v1647_v57 = vpop.f32.mrb[3].mxu1 }
 0x32e   : > { %v1721_v58 = vmul.f32 0.05, %v1644_v53  ;;  %v1648_v59 = vadd.f32 %v1647_v57, %v2762_v49 }
 0x32f   : > { %v1722_v15 = vmul.f32 0.05, %v1646_v56  ;;  %v1752_v61 = vmax.f32 %v1642_v51, %v1720_v55 }
 0x330   : > { %v1723_v60 = vmul.f32 0.05, %v1648_v59  ;;  %v1753_v17 = vmax.f32 %v1644_v53, %v1721_v58 }
 0x331   : > { %v1754_v14 = vmax.f32 %v1646_v56, %v1722_v15 }
 0x332   : > { %v1755_v62 = vmax.f32 %v1648_v59, %v1723_v60  ;;  %v1651_v63 = vpop.f32.mrb[4].mxu1 }
 0x333   : > { %v1785_v0 = vpack.c.bf16 %v1754_v14, %v1752_v61  ;;  %v1652_v1 = vadd.f32 %v1651_v63, %v2758_v48  ;;  %v1653_v2 = vpop.f32.mrb[5].mxu1 }
 0x334   : > { %v1654_v3 = vadd.f32 %v1653_v2, %v2762_v49  ;;  %v1655_v4 = vpop.f32.mrb[6].mxu1  ;;  %v1786_v5 = vpack.c.bf16 %v1755_v62, %v1753_v17 }
 0x335   : > { %v1724_v6 = vmul.f32 0.05, %v1652_v1  ;;  %v1656_v7 = vadd.f32 %v1655_v4, %v2758_v48  ;;  %v1657_v8 = vpop.f32.mrb[7].mxu1 }
 0x336   : > { %v1725_v9 = vmul.f32 0.05, %v1654_v3  ;;  %v1658_v10 = vadd.f32 %v1657_v8, %v2762_v49  ;;  %1814 = vmatprep.subr.bf16.mxu0 %v1786_v5 }
 0x337   : > { %v1726_v11 = vmul.f32 0.05, %v1656_v7  ;;  %1815 = vmatpush1.bf16.xpose.msra.mxu0 %v1785_v0  ;;  %v1756_v13 = vmax.f32 %v1652_v1, %v1724_v6 }
 0x338   : > { %v1727_v12 = vmul.f32 0.05, %v1658_v10  ;;  %v1757_v20 = vmax.f32 %v1654_v3, %v1725_v9 }
 0x339   : > { %v1758_v16 = vmax.f32 %v1656_v7, %v1726_v11 }
 0x33a   : > { %v1759_v21 = vmax.f32 %v1658_v10, %v1727_v12  ;;  %v1661_v22 = vpop.f32.mrb[8].mxu1 }
 0x33b   : > { %v1787_v23 = vpack.c.bf16 %v1758_v16, %v1756_v13  ;;  %v1662_v24 = vadd.f32 %v1661_v22, %v2758_v48  ;;  %v1663_v25 = vpop.f32.mrb[9].mxu1 }
 0x33c   : > { %v1664_v26 = vadd.f32 %v1663_v25, %v2762_v49  ;;  %v1665_v27 = vpop.f32.mrb[10].mxu1  ;;  %v1788_v28 = vpack.c.bf16 %v1759_v21, %v1757_v20 }
 0x33d   : > { %v1728_v29 = vmul.f32 0.05, %v1662_v24  ;;  %v1666_v30 = vadd.f32 %v1665_v27, %v2758_v48  ;;  %v1667_v31 = vpop.f32.mrb[11].mxu1 }
 0x33e   : > { %v1729_v32 = vmul.f32 0.05, %v1664_v26  ;;  %v1668_v33 = vadd.f32 %v1667_v31, %v2762_v49  ;;  %1816 = vmatprep.subr.bf16.mxu0 %v1788_v28 }
 0x33f   : > { %v1730_v34 = vmul.f32 0.05, %v1666_v30  ;;  %1817 = vmatpush1.bf16.xpose.msra.mxu0 %v1787_v23  ;;  %v1760_v36 = vmax.f32 %v1662_v24, %v1728_v29 }
 0x340   : > { %v1731_v35 = vmul.f32 0.05, %v1668_v33  ;;  %v1761_v38 = vmax.f32 %v1664_v26, %v1729_v32 }
 0x341   : > { %v1762_v37 = vmax.f32 %v1666_v30, %v1730_v34 }
 0x342   : > { %v1763_v39 = vmax.f32 %v1668_v33, %v1731_v35  ;;  %v1671_v40 = vpop.f32.mrb[12].mxu1 }
 0x343   : > { %v1789_v41 = vpack.c.bf16 %v1762_v37, %v1760_v36  ;;  %v1672_v42 = vadd.f32 %v1671_v40, %v2758_v48  ;;  %v1673_v43 = vpop.f32.mrb[13].mxu1 }
 0x344   : > { %v1674_v44 = vadd.f32 %v1673_v43, %v2762_v49  ;;  %v1675_v45 = vpop.f32.mrb[14].mxu1  ;;  %v1790_v46 = vpack.c.bf16 %v1763_v39, %v1761_v38 }
 0x345   : > { %v1732_v19 = vmul.f32 0.05, %v1672_v42  ;;  %v1676_v47 = vadd.f32 %v1675_v45, %v2758_v48  ;;  %v1677_v50 = vpop.f32.mrb[15].mxu1 }
 0x346   : > { %v1733_v51 = vmul.f32 0.05, %v1674_v44  ;;  %v1678_v52 = vadd.f32 %v1677_v50, %v2762_v49  ;;  %1818 = vmatprep.subr.bf16.mxu0 %v1790_v46 }
 0x347   : > { %v1734_v53 = vmul.f32 0.05, %v1676_v47  ;;  %1819 = vmatpush1.bf16.xpose.msra.mxu0 %v1789_v41  ;;  %v1764_v55 = vmax.f32 %v1672_v42, %v1732_v19 }
 0x348   : > { %v1735_v54 = vmul.f32 0.05, %v1678_v52  ;;  %v1765_v57 = vmax.f32 %v1674_v44, %v1733_v51 }
 0x349   : > { %v1766_v56 = vmax.f32 %v1676_v47, %v1734_v53 }
 0x34a   : > { %v1767_v58 = vmax.f32 %v1678_v52, %v1735_v54  ;;  %v1681_v59 = vpop.f32.mrb[16].mxu1 }
 0x34b   : > { %v1791_v15 = vpack.c.bf16 %v1766_v56, %v1764_v55  ;;  %v1682_v60 = vadd.f32 %v1681_v59, %v2758_v48  ;;  %v1683_v61 = vpop.f32.mrb[17].mxu1 }
 0x34c   : > { %v1684_v14 = vadd.f32 %v1683_v61, %v2762_v49  ;;  %v1685_v17 = vpop.f32.mrb[18].mxu1  ;;  %v1792_v62 = vpack.c.bf16 %v1767_v58, %v1765_v57 }
 0x34d   : > { %v1736_v63 = vmul.f32 0.05, %v1682_v60  ;;  %v1686_v0 = vadd.f32 %v1685_v17, %v2758_v48  ;;  %v1687_v1 = vpop.f32.mrb[19].mxu1 }
 0x34e   : > { %v1737_v2 = vmul.f32 0.05, %v1684_v14  ;;  %v1688_v3 = vadd.f32 %v1687_v1, %v2762_v49  ;;  %1820 = vmatprep.subr.bf16.mxu0 %v1792_v62 }
 0x34f   : > { %v1738_v4 = vmul.f32 0.05, %v1686_v0  ;;  %1821 = vmatpush1.bf16.xpose.msra.mxu0 %v1791_v15  ;;  %v1768_v6 = vmax.f32 %v1682_v60, %v1736_v63 }
 0x350   : > { %v1739_v5 = vmul.f32 0.05, %v1688_v3  ;;  %v1769_v8 = vmax.f32 %v1684_v14, %v1737_v2 }
 0x351   : > { %v1770_v7 = vmax.f32 %v1686_v0, %v1738_v4 }
 0x352   : > { %v1771_v9 = vmax.f32 %v1688_v3, %v1739_v5  ;;  %v1691_v10 = vpop.f32.mrb[20].mxu1 }
 0x353   : > { %v1793_v11 = vpack.c.bf16 %v1770_v7, %v1768_v6  ;;  %v1692_v12 = vadd.f32 %v1691_v10, %v2758_v48  ;;  %v1693_v13 = vpop.f32.mrb[21].mxu1 }
 0x354   : > { %v1694_v16 = vadd.f32 %v1693_v13, %v2762_v49  ;;  %v1695_v20 = vpop.f32.mrb[22].mxu1  ;;  %v1794_v21 = vpack.c.bf16 %v1771_v9, %v1769_v8 }
 0x355   : > { %v1740_v22 = vmul.f32 0.05, %v1692_v12  ;;  %v1696_v23 = vadd.f32 %v1695_v20, %v2758_v48  ;;  %v1697_v24 = vpop.f32.mrb[23].mxu1 }
 0x356   : > { %v1741_v25 = vmul.f32 0.05, %v1694_v16  ;;  %v1698_v26 = vadd.f32 %v1697_v24, %v2762_v49  ;;  %1822 = vmatprep.subr.bf16.mxu0 %v1794_v21 }
 0x357   : > { %v1742_v27 = vmul.f32 0.05, %v1696_v23  ;;  %1823 = vmatpush1.bf16.xpose.msra.mxu0 %v1793_v11  ;;  %v1772_v29 = vmax.f32 %v1692_v12, %v1740_v22 }
 0x358   : > { %v1743_v28 = vmul.f32 0.05, %v1698_v26  ;;  %v1773_v31 = vmax.f32 %v1694_v16, %v1741_v25 }
 0x359   : > { %v1774_v30 = vmax.f32 %v1696_v23, %v1742_v27 }
 0x35a   : > { %v1775_v32 = vmax.f32 %v1698_v26, %v1743_v28  ;;  %v1701_v33 = vpop.f32.mrb[24].mxu1 }
 0x35b   : > { %v1795_v34 = vpack.c.bf16 %v1774_v30, %v1772_v29  ;;  %v1702_v35 = vadd.f32 %v1701_v33, %v2758_v48  ;;  %v1703_v36 = vpop.f32.mrb[25].mxu1 }
 0x35c   : > { %v1704_v37 = vadd.f32 %v1703_v36, %v2762_v49  ;;  %v1705_v38 = vpop.f32.mrb[26].mxu1  ;;  %v1796_v39 = vpack.c.bf16 %v1775_v32, %v1773_v31 }
 0x35d   : > { %v1744_v40 = vmul.f32 0.05, %v1702_v35  ;;  %v1706_v41 = vadd.f32 %v1705_v38, %v2758_v48  ;;  %v1707_v42 = vpop.f32.mrb[27].mxu1 }
 0x35e   : > { %v1745_v43 = vmul.f32 0.05, %v1704_v37  ;;  %v1708_v44 = vadd.f32 %v1707_v42, %v2762_v49  ;;  %1824 = vmatprep.subr.bf16.mxu0 %v1796_v39 }
 0x35f   : > { %v1746_v45 = vmul.f32 0.05, %v1706_v41  ;;  %1825 = vmatpush1.bf16.xpose.msra.mxu0 %v1795_v34  ;;  %v1776_v19 = vmax.f32 %v1702_v35, %v1744_v40 }
 0x360   : > { %v1747_v46 = vmul.f32 0.05, %v1708_v44  ;;  %v1777_v50 = vmax.f32 %v1704_v37, %v1745_v43 }
 0x361   : > { %v1778_v47 = vmax.f32 %v1706_v41, %v1746_v45 }
 0x362   : > { %v1779_v51 = vmax.f32 %v1708_v44, %v1747_v46  ;;  %v1711_v52 = vpop.f32.mrb[28].mxu1 }
 0x363   : > { %v1797_v53 = vpack.c.bf16 %v1778_v47, %v1776_v19  ;;  %v1712_v54 = vadd.f32 %v1711_v52, %v2758_v48  ;;  %v1713_v55 = vpop.f32.mrb[29].mxu1 }
 0x364   : > { %v1714_v56 = vadd.f32 %v1713_v55, %v2762_v49  ;;  %v1715_v57 = vpop.f32.mrb[30].mxu1  ;;  %v1798_v58 = vpack.c.bf16 %v1779_v51, %v1777_v50 }
 0x365   : > { %v1748_v59 = vmul.f32 0.05, %v1712_v54  ;;  %v1716_v15 = vadd.f32 %v1715_v57, %v2758_v48  ;;  %v1717_v60 = vpop.f32.mrb[31].mxu1  ;;  %v2122_v48 = vcombine.low %v2750_v18, %v2750_v18 }
 0x366   : > { %v1749_v61 = vmul.f32 0.05, %v1714_v56  ;;  %v1718_v14 = vadd.f32 %v1717_v60, %v2762_v49  ;;  %1826 = vmatprep.subr.bf16.mxu0 %v1798_v58  ;;  %v1805_v49 = vpop.permute.xlu0 %1804 }
 0x367   : > { %v1750_v17 = vmul.f32 0.05, %v1716_v15  ;;  %1827 = vmatpush1.bf16.xpose.msra.mxu0 %v1797_v53  ;;  %v1780_v63 = vmax.f32 %v1712_v54, %v1748_v59 }
 0x368   : > { %v1751_v62 = vmul.f32 0.05, %v1718_v14  ;;  %v1781_v1 = vmax.f32 %v1714_v56, %v1749_v61 }
 0x369   : > { %v1782_v0 = vmax.f32 %v1716_v15, %v1750_v17 }
 0x36a   : > { %v1783_v2 = vmax.f32 %v1718_v14, %v1751_v62 }
 0x36b   : > { %v1799_v3 = vpack.c.bf16 %v1782_v0, %v1780_v63 }
 0x36c   : > { %v1800_v4 = vpack.c.bf16 %v1783_v2, %v1781_v1 }
 0x36e   : > { %1828 = vmatprep.subr.bf16.mxu0 %v1800_v4 }
 0x36f   : > { %1829 = vmatpush1.bf16.xpose.msra.mxu0 %v1799_v3 }
 0x376   : > { %1847 = vmatmul.mubr.bf16.vlgmr.msra.gmra.mrb[32].mxu0 %v2122_v48 }
 0x449   : > { %v1848_v5 = vpop.f32.mrb[32].mxu0 }
 0x44a   : > { %v1849_v6 = vadd.f32 %v1848_v5, %v1805_v49  ;;  %v1850_v7 = vpop.f32.mrb[33].mxu0 }
 0x44b   : > { %v1851_v18 = vpop.f32.mrb[34].mxu0 }
 0x44c   : > { %1854 = vst [vmem:[%s412_s2] sm:$0xff] %v1849_v6  ;;  %v1852_v8 = vpop.f32.mrb[35].mxu0 }
 0x44d   : > { %2329 = shalt.err (!%p2326_p11)
}
 0x44e   : > { %s2330_s2 = scalar_lea.hbm %s2805_s25, 128  ;;  %s2334_s17 = scalar_lea.hbm %s2870_s8, 512 }
 0x44f   : > { %p2331_p13 = scmp.ne.s32.totalorder %s2805_s25, %s2330_s2  ;;  %p2335_p3 = scmp.lt.u32.totalorder %s2805_s25, %s2870_s8 }
 0x450   : > { %p2336_p8 = scmp.lt.u32.totalorder %s2334_s17, %s2330_s2  ;;  %p2338_p12 = scmp.lt.u32.totalorder %s2330_s2, %s2805_s25 }
 0x451   : > { %p2332_p1 = pnand %p2331_p13, %p2907_p0 }
 0x452   : > { %p2337_p10 = por %p2336_p8, %p2335_p3 }
 0x453   : > { %p2333_p4 = pneg %p2332_p1 }
 0x454   : > { %p2339_p2 = por %p2338_p12, %p2337_p10 }
 0x456   : > { %p2340_p5 = pnand %p2339_p2, %p2333_p4 }
 0x458   : > { %2343 = shalt.err (!%p2340_p5)
}
 0x459   : > { %2136 = dma.vmem_to_hbm [thread:$0]  (%p2907_p0), %s2807_s27, 128, %s2805_s25, %s1856_s9  }
 0x45a PF: > { %s2908_s15 = sld [smem:[#allocation9_spill]]  ;;  %s2909_s21 = sld [smem:[#allocation15_spill]] }
 0x45b   : > { %p2148_p6 = scmp.ge.s32.totalorder %s2414_s12, 2 }
 0x460   : > { %s1883_s10 = sand.u32 1, %s2908_s15   ;;  %p2910_p7 = scmp.ne.s32.totalorder %s2909_s21, 0 }
 0x461   : > { %s1884_s11 = scalar_lea.sflag [#allocation5], %s1883_s10 }
 0x462   : > { %p2143_p9 = pnand %p2148_p6, %p2910_p7 }
 0x464   : > { %2381 = dma.done.wait (!%p2143_p9), %s1884_s11, 128  }
 0x465   : > { %2383 = vsyncadd (!%p2143_p9), %s1884_s11, 4294967168  ;;  %s22_s12 = sadd.s32 1, %s2414_s12   ;;  %s2911_s0 = sld [smem:[#allocation10_spill]] }
 0x466   : > { %p19_p11 = scmp.ge.s32.totalorder %s22_s12, 6   ;;  %s2912_s29 = sld [smem:[#allocation16_spill]] }
 0x467   : > { %s2913_s30 = sld [smem:[#allocation11_spill]]  ;;  %s2914_s9 = sld [smem:[#allocation12_spill]] }
 0x468   : > { %s2915_s10 = sld [smem:[#allocation13_spill]]  ;;  %s2916_s11 = sld [smem:[#allocation14_spill]] }
 0x469   : > { %s2917_s27 = smov %s2390_s28  ;;  %21 = sbr.rel (!%p19_p11) target bundleno = 11 (0xb), region = 114 }
 0x46b   : > { %s2918_s28 = smov %s2911_s0 }
 0x470   :  { %1889 = vsyncpa [#allocation4], 1 }
 0x471   :  { %1891 = vsyncpa [#allocation4 + $0x1], 1 }
 0x472   :  { %1892 = vsyncpa [#allocation5], 1 }
 0x473   :  { %1894 = vsyncpa [#allocation5 + $0x1], 1 }

</bundles_post_ra>
